<compile_context>
chip_gen: v7x
topology: tpu7x:2x2x1
jax: 0.10.0
libtpu: 0.0.40
codegen_flags: <defaults>
</compile_context>

<pallas_src>
import numpy as np
import jax
import jax.numpy as jnp
from jax.experimental import pallas as pl
from jax.experimental.pallas import tpu as pltpu

LRELU_GAIN = float(np.sqrt(2.0))  # bias_act def_gain for 'lrelu'


# ----------------------------------------------------------------------------- fused kernel

def _fused_block_kernel(base_ref, prior_ref, wib_ref, ws0_ref, ws1_ref,
                        a1_ref, b1_ref, a2_ref, b2_ref,
                        wk_ref, ssum_ref, cb_ref, wrgb_ref, rgbb_ref,
                        x_out_ref, img_out_ref, xp_scr):
    # One grid step == one batch sample (grid axis marked "parallel" for v7x megacore).
    Rp = xp_scr.shape[0]
    C = xp_scr.shape[2]
    R = Rp - 2
    M = R * R

    # --- conv_inter_1 (1x1, 2C->C): base already holds const @ W_top + bias -----------
    x1 = base_ref[...] + jnp.dot(prior_ref[0], wib_ref[...],
                                 preferred_element_type=jnp.float32)          # (M, C)

    # --- per-sample style affines -----------------------------------------------------
    s1 = jnp.dot(ws0_ref[0], a1_ref[...],
                 preferred_element_type=jnp.float32) + b1_ref[...]            # (1, C)
    s2 = jnp.dot(ws1_ref[0], a2_ref[...],
                 preferred_element_type=jnp.float32) + b2_ref[...]            # (1, C) pre-scaled

    # --- demodulation coefficients: rsqrt(sum_i s_i^2 * sum_k W^2 + 1e-8) -------------
    d = jax.lax.rsqrt(jnp.dot(s1 * s1, ssum_ref[...],
                              preferred_element_type=jnp.float32) + 1e-8)     # (1, Cout)

    # --- modulate activations and zero-pad (halo=0) into VMEM scratch -----------------
    xm = x1 * s1                                                              # (M, C)
    xp_scr[...] = jnp.zeros_like(xp_scr)
    xp_scr[1:R + 1, 1:R + 1, :] = xm.reshape(R, R, C)
    xp = xp_scr[...]                                                          # (Rp, Rp, C)

    # --- 3x3 conv as ONE im2col matmul: K = 9*C fills the MXU depth --------------------
    cols = [xp[dy:dy + R, dx:dx + R, :].reshape(M, C)
            for dy in range(3) for dx in range(3)]
    lhs = jnp.concatenate(cols, axis=-1).astype(jnp.bfloat16)                 # (M, 9C)
    acc = jnp.dot(lhs, wk_ref[...], preferred_element_type=jnp.float32)       # (M, Cout)

    # --- demod + bias + leaky_relu(0.2) * sqrt(2) --------------------------------------
    y = acc * d + cb_ref[...]
    y = jnp.where(y >= 0.0, y, 0.2 * y) * LRELU_GAIN
    x_out_ref[0] = y.astype(x_out_ref.dtype)

    # --- torgb: modulated 1x1 conv (no demod) + bias, fused epilogue -------------------
    img = jnp.dot(y * s2, wrgb_ref[...],
                  preferred_element_type=jnp.float32) + rgbb_ref[...]         # (M, IC)
    img_out_ref[0] = img.astype(img_out_ref.dtype)


# ----------------------------------------------------------------------------- param prep

def prepare_params(params, cfg):
    """One-time weight preprocessing (transposes, gains, im2col layout, const folding)."""
    C, R, WD, IC = cfg["out_channels"], cfg["resolution"], cfg["w_dim"], cfg["img_channels"]
    hi = jax.lax.Precision.HIGHEST

    # conv_inter_1: Conv2dLayer 1x1, weight_gain = 1/sqrt(2C), linear activation.
    w_i = params["inter1_w"].reshape(C, 2 * C).astype(jnp.float32) * (1.0 / np.sqrt(2 * C))
    m_top = jnp.transpose(w_i[:, :C], (1, 0))     # const  -> out   (C, C)
    m_bot = jnp.transpose(w_i[:, C:], (1, 0))     # prior  -> out   (C, C)
    const_flat = jnp.transpose(params["const"], (1, 2, 0)).reshape(R * R, C)  # NHWC flat
    # const is a parameter and batch-invariant -> fold const @ W_top + bias once.
    base = jnp.dot(const_flat.astype(jnp.float32), m_top, precision=hi) \
        + params["inter1_b"].astype(jnp.float32)[None, :]                     # (R*R, C)

    # conv1 affine (FullyConnectedLayer, bias_init=1): styles = ws @ (W.T/sqrt(WD)) + b.
    a1 = jnp.transpose(params["conv1_affine_w"].astype(jnp.float32) * (1.0 / np.sqrt(WD)), (1, 0))
    b1 = params["conv1_affine_b"].astype(jnp.float32)[None, :]

    # torgb affine, with the ToRGB weight_gain 1/sqrt(C) folded into weight AND bias.
    a2 = jnp.transpose(params["rgb_affine_w"].astype(jnp.float32) * (1.0 / np.sqrt(WD)), (1, 0)) \
        * (1.0 / np.sqrt(C))
    b2 = params["rgb_affine_b"].astype(jnp.float32)[None, :] * (1.0 / np.sqrt(C))

    # conv1 weight: im2col layout [ (dy,dx) major, Cin minor ] x Cout, bf16 for the MXU.
    W1 = params["conv1_w"].astype(jnp.float32)                                # (Cout, Cin, 3, 3)
    wk = jnp.transpose(W1, (2, 3, 1, 0)).reshape(9 * C, C).astype(jnp.bfloat16)
    ssum = jnp.transpose(jnp.sum(W1 * W1, axis=(2, 3)), (1, 0))               # (Cin, Cout)
    cb = params["conv1_b"].astype(jnp.float32)[None, :]

    w_rgb = jnp.transpose(params["rgb_w"].reshape(IC, C).astype(jnp.float32), (1, 0))  # (C, IC)
    rgbb = params["rgb_b"].astype(jnp.float32)[None, :]

    return dict(base=base, m_bot=m_bot, a1=a1, b1=b1, a2=a2, b2=b2,
                wk=wk, ssum=ssum, cb=cb, w_rgb=w_rgb, rgbb=rgbb)


# ----------------------------------------------------------------------------- forward

def synthesis_block_prior_forward(prep, ws, prior, cfg):
    """in_channels == 0 SynthesisBlockPrior.forward.  Inputs/outputs are NCHW (PyTorch)."""
    N = ws.shape[0]
    C, R, WD, IC = cfg["out_channels"], cfg["resolution"], cfg["w_dim"], cfg["img_channels"]

    prior1 = jnp.transpose(prior[1].astype(jnp.float32), (0, 2, 3, 1)).reshape(N, R * R, C)
    ws0 = ws[:, 0, :].astype(jnp.float32).reshape(N, 1, WD)
    ws1 = ws[:, 1, :].astype(jnp.float32).reshape(N, 1, WD)

    x_flat, img_flat = pl.pallas_call(
        _fused_block_kernel,
        out_shape=(jax.ShapeDtypeStruct((N, R * R, C), jnp.float32),
                   jax.ShapeDtypeStruct((N, R * R, IC), jnp.float32)),
        grid=(N,),
        in_specs=[
            pl.BlockSpec((R * R, C), lambda n: (0, 0)),        # base  (const@W_top + b)
            pl.BlockSpec((1, R * R, C), lambda n: (n, 0, 0)),  # prior[1], per sample
            pl.BlockSpec((C, C), lambda n: (0, 0)),            # W_bot (prior -> out)
            pl.BlockSpec((1, 1, WD), lambda n: (n, 0, 0)),     # ws[:,0]
            pl.BlockSpec((1, 1, WD), lambda n: (n, 0, 0)),     # ws[:,1]
            pl.BlockSpec((WD, C), lambda n: (0, 0)),           # conv1 affine W
            pl.BlockSpec((1, C), lambda n: (0, 0)),            # conv1 affine b
            pl.BlockSpec((WD, C), lambda n: (0, 0)),           # torgb affine W (pre-scaled)
            pl.BlockSpec((1, C), lambda n: (0, 0)),            # torgb affine b (pre-scaled)
            pl.BlockSpec((9 * C, C), lambda n: (0, 0)),        # conv1 weight (im2col, bf16)
            pl.BlockSpec((C, C), lambda n: (0, 0)),            # sum_k W^2 (demod)
            pl.BlockSpec((1, C), lambda n: (0, 0)),            # conv1 bias
            pl.BlockSpec((C, IC), lambda n: (0, 0)),           # rgb weight
            pl.BlockSpec((1, IC), lambda n: (0, 0)),           # rgb bias
        ],
        out_specs=[
            pl.BlockSpec((1, R * R, C), lambda n: (n, 0, 0)),
            pl.BlockSpec((1, R * R, IC), lambda n: (n, 0, 0)),
        ],
        scratch_shapes=[pltpu.VMEM((R + 2, R + 2, C), jnp.float32)],
        compiler_params=pltpu.CompilerParams(dimension_semantics=("parallel",)),
    )(prep["base"], prior1, prep["m_bot"], ws0, ws1,
      prep["a1"], prep["b1"], prep["a2"], prep["b2"],
      prep["wk"], prep["ssum"], prep["cb"], prep["w_rgb"], prep["rgbb"])

    x_nchw = jnp.transpose(x_flat.reshape(N, R, R, C), (0, 3, 1, 2))
    img_nchw = jnp.transpose(img_flat.reshape(N, R, R, IC), (0, 3, 1, 2)).astype(jnp.float32)
    return x_nchw, img_nchw


# --------------------------------------------------------------------- pure-JAX reference

def reference_forward(params, ws, prior, cfg):
    N = ws.shape[0]
    C, R, WD, IC = cfg["out_channels"], cfg["resolution"], cfg["w_dim"], cfg["img_channels"]
    hi = jax.lax.Precision.HIGHEST
    x = jnp.broadcast_to(params["const"][None], (N, C, R, R))
    x = jnp.concatenate([x, prior[1]], axis=1)
    w_i = params["inter1_w"].reshape(C, 2 * C) / np.sqrt(2 * C)
    x = jnp.einsum("oc,nchw->nohw", w_i, x, precision=hi) \
        + params["inter1_b"][None, :, None, None]
    styles = jnp.einsum("nk,ck->nc", ws[:, 0],
                        params["conv1_affine_w"] / np.sqrt(WD), precision=hi) \
        + params["conv1_affine_b"]
    W1 = params["conv1_w"]
    xm = x * styles[:, :, None, None]
    z = jax.lax.conv_general_dilated(xm, W1, (1, 1), ((1, 1), (1, 1)),
                                     dimension_numbers=("NCHW", "OIHW", "NCHW"),
                                     precision=hi)
    d = jax.lax.rsqrt(jnp.einsum("ni,oi->no", styles ** 2,
                                 jnp.sum(W1 ** 2, axis=(2, 3)), precision=hi) + 1e-8)
    z = z * d[:, :, None, None] + params["conv1_b"][None, :, None, None]
    z = jnp.where(z >= 0, z, 0.2 * z) * LRELU_GAIN
    s2 = (jnp.einsum("nk,ck->nc", ws[:, 1],
                     params["rgb_affine_w"] / np.sqrt(WD), precision=hi)
          + params["rgb_affine_b"]) / np.sqrt(C)
    img = jnp.einsum("oi,nihw->nohw", params["rgb_w"].reshape(IC, C),
                     z * s2[:, :, None, None], precision=hi) \
        + params["rgb_b"][None, :, None, None]
    return z, img


# ------------------------------------------------------------------------------- main

if __name__ == "__main__":
    N, C, R, WD, IC = 2, 32, 8, 32, 3
    cfg = dict(out_channels=C, resolution=R, w_dim=WD, img_channels=IC)

    key = jax.random.PRNGKey(0)
    k = jax.random.split(key, 16)
    # Deterministic synthetic parameters (shapes follow the module's __init__).
    # Conv biases are small random (module init is zeros) so the bias path is exercised;
    # affine biases = 1 as in FullyConnectedLayer(bias_init=1).
    params = {
        "const":          jax.random.normal(k[0], (C, R, R), jnp.float32),
        "inter1_w":       jax.random.normal(k[1], (C, 2 * C, 1, 1), jnp.float32),
        "inter1_b":       0.1 * jax.random.normal(k[2], (C,), jnp.float32),
        "conv1_affine_w": jax.random.normal(k[3], (C, WD), jnp.float32),
        "conv1_affine_b": jnp.ones((C,), jnp.float32),
        "conv1_w":        jax.random.normal(k[4], (C, C, 3, 3), jnp.float32),
        "conv1_b":        0.1 * jax.random.normal(k[5], (C,), jnp.float32),
        "rgb_affine_w":   jax.random.normal(k[6], (C, WD), jnp.float32),
        "rgb_affine_b":   jnp.ones((C,), jnp.float32),
        "rgb_w":          jax.random.normal(k[7], (IC, C, 1, 1), jnp.float32),
        "rgb_b":          0.1 * jax.random.normal(k[8], (IC,), jnp.float32),
    }

    ws = jax.random.normal(k[9], (N, 2, WD), jnp.float32)         # [N, num_conv+num_torgb, w_dim]
    prior1 = jax.random.normal(k[10], (N, C, R, R), jnp.float32)  # NCHW, matches const block
    prior = (None, prior1)                                        # prior[0] unused when in_channels==0

    prep = prepare_params(params, cfg)                            # one-time weight prep

    @jax.jit
    def fwd(prep, ws, prior1):
        return synthesis_block_prior_forward(prep, ws, (None, prior1), cfg)

    x_out, img_out = fwd(prep, ws, prior1)
    (x_out, img_out) = jax.block_until_ready((x_out, img_out))

    x_ref, img_ref = reference_forward(params, ws, prior, cfg)
    err_x = float(jnp.max(jnp.abs(x_out - x_ref)))
    err_i = float(jnp.max(jnp.abs(img_out - img_ref)))
    assert x_out.shape == (N, C, R, R) and img_out.shape == (N, IC, R, R)
    assert x_out.dtype == jnp.float32 and img_out.dtype == jnp.float32
    assert err_x < 5e-2 and err_i < 5e-2, (err_x, err_i)
    print("KERNEL_OK")
</pallas_src>

<mosaic_0001>
module attributes {stable_mosaic.version = 11 : i64} {
  func.func @_fused_block_kernel(%arg0: i32, %arg1: memref<64x32xf32, #tpu.memory_space<vmem>>, %arg2: memref<1x64x32xf32, #tpu.memory_space<vmem>>, %arg3: memref<32x32xf32, #tpu.memory_space<vmem>>, %arg4: memref<1x1x32xf32, #tpu.memory_space<vmem>>, %arg5: memref<1x1x32xf32, #tpu.memory_space<vmem>>, %arg6: memref<32x32xf32, #tpu.memory_space<vmem>>, %arg7: memref<1x32xf32, #tpu.memory_space<vmem>>, %arg8: memref<32x32xf32, #tpu.memory_space<vmem>>, %arg9: memref<1x32xf32, #tpu.memory_space<vmem>>, %arg10: memref<288x32xbf16, #tpu.memory_space<vmem>>, %arg11: memref<32x32xf32, #tpu.memory_space<vmem>>, %arg12: memref<1x32xf32, #tpu.memory_space<vmem>>, %arg13: memref<32x3xf32, #tpu.memory_space<vmem>>, %arg14: memref<1x3xf32, #tpu.memory_space<vmem>>, %arg15: memref<1x64x32xf32, #tpu.memory_space<vmem>>, %arg16: memref<1x64x3xf32, #tpu.memory_space<vmem>>, %arg17: memref<10x10x32xf32, #tpu.memory_space<vmem>>) attributes {dimension_semantics = [#tpu.dimension_semantics<parallel>], iteration_bounds = array<i64: 2>, scalar_prefetch = 0 : i64, scratch_operands = 1 : i64, tpu.core_type = #tpu.core_type<tc>, window_params = [{pipeline_mode = #tpu.pipeline_mode<synchronous>, transform_indices = @transform_0, window_bounds = array<i64: 64, 32>}, {transform_indices = @transform_1, window_bounds = array<i64: 1, 64, 32>}, {pipeline_mode = #tpu.pipeline_mode<synchronous>, transform_indices = @transform_2, window_bounds = array<i64: 32, 32>}, {transform_indices = @transform_3, window_bounds = array<i64: 1, 1, 32>}, {transform_indices = @transform_4, window_bounds = array<i64: 1, 1, 32>}, {pipeline_mode = #tpu.pipeline_mode<synchronous>, transform_indices = @transform_5, window_bounds = array<i64: 32, 32>}, {pipeline_mode = #tpu.pipeline_mode<synchronous>, transform_indices = @transform_6, window_bounds = array<i64: 1, 32>}, {pipeline_mode = #tpu.pipeline_mode<synchronous>, transform_indices = @transform_7, window_bounds = array<i64: 32, 32>}, {pipeline_mode = #tpu.pipeline_mode<synchronous>, transform_indices = @transform_8, window_bounds = array<i64: 1, 32>}, {pipeline_mode = #tpu.pipeline_mode<synchronous>, transform_indices = @transform_9, window_bounds = array<i64: 288, 32>}, {pipeline_mode = #tpu.pipeline_mode<synchronous>, transform_indices = @transform_10, window_bounds = array<i64: 32, 32>}, {pipeline_mode = #tpu.pipeline_mode<synchronous>, transform_indices = @transform_11, window_bounds = array<i64: 1, 32>}, {pipeline_mode = #tpu.pipeline_mode<synchronous>, transform_indices = @transform_12, window_bounds = array<i64: 32, 3>}, {pipeline_mode = #tpu.pipeline_mode<synchronous>, transform_indices = @transform_13, window_bounds = array<i64: 1, 3>}, {transform_indices = @transform_14, window_bounds = array<i64: 1, 64, 32>}, {transform_indices = @transform_15, window_bounds = array<i64: 1, 64, 3>}]} {
    %c0 = arith.constant 0 : index
    %c0_0 = arith.constant 0 : index
    %0 = vector.load %arg1[%c0, %c0_0] : memref<64x32xf32, #tpu.memory_space<vmem>>, vector<64x32xf32>
    %c0_1 = arith.constant 0 : index
    %c0_2 = arith.constant 0 : index
    %c0_3 = arith.constant 0 : index
    %1 = vector.load %arg2[%c0_1, %c0_2, %c0_3] : memref<1x64x32xf32, #tpu.memory_space<vmem>>, vector<1x64x32xf32>
    %2 = vector.shape_cast %1 : vector<1x64x32xf32> to vector<64x32xf32>
    %c0_4 = arith.constant 0 : index
    %c0_5 = arith.constant 0 : index
    %3 = vector.load %arg3[%c0_4, %c0_5] : memref<32x32xf32, #tpu.memory_space<vmem>>, vector<32x32xf32>
    %cst = arith.constant dense<0.000000e+00> : vector<64x32xf32>
    %4 = tpu.matmul %2, %3, %cst {dimension_numbers = #tpu.dot_dimension_numbers<[1], [0], [0], [1], [0, 0, 1, 1], [], []>} : vector<64x32xf32>, vector<32x32xf32>, vector<64x32xf32> -> vector<64x32xf32>
    %5 = arith.addf %0, %4 : vector<64x32xf32>
    %c0_6 = arith.constant 0 : index
    %c0_7 = arith.constant 0 : index
    %c0_8 = arith.constant 0 : index
    %6 = vector.load %arg4[%c0_6, %c0_7, %c0_8] : memref<1x1x32xf32, #tpu.memory_space<vmem>>, vector<1x1x32xf32>
    %7 = vector.shape_cast %6 : vector<1x1x32xf32> to vector<1x32xf32>
    %c0_9 = arith.constant 0 : index
    %c0_10 = arith.constant 0 : index
    %8 = vector.load %arg6[%c0_9, %c0_10] : memref<32x32xf32, #tpu.memory_space<vmem>>, vector<32x32xf32>
    %cst_11 = arith.constant dense<0.000000e+00> : vector<1x32xf32>
    %9 = tpu.matmul %7, %8, %cst_11 {dimension_numbers = #tpu.dot_dimension_numbers<[1], [0], [0], [1], [0, 0, 1, 1], [], []>} : vector<1x32xf32>, vector<32x32xf32>, vector<1x32xf32> -> vector<1x32xf32>
    %c0_12 = arith.constant 0 : index
    %c0_13 = arith.constant 0 : index
    %10 = vector.load %arg7[%c0_12, %c0_13] : memref<1x32xf32, #tpu.memory_space<vmem>>, vector<1x32xf32>
    %11 = arith.addf %9, %10 : vector<1x32xf32>
    %c0_14 = arith.constant 0 : index
    %c0_15 = arith.constant 0 : index
    %c0_16 = arith.constant 0 : index
    %12 = vector.load %arg5[%c0_14, %c0_15, %c0_16] : memref<1x1x32xf32, #tpu.memory_space<vmem>>, vector<1x1x32xf32>
    %13 = vector.shape_cast %12 : vector<1x1x32xf32> to vector<1x32xf32>
    %c0_17 = arith.constant 0 : index
    %c0_18 = arith.constant 0 : index
    %14 = vector.load %arg8[%c0_17, %c0_18] : memref<32x32xf32, #tpu.memory_space<vmem>>, vector<32x32xf32>
    %cst_19 = arith.constant dense<0.000000e+00> : vector<1x32xf32>
    %15 = tpu.matmul %13, %14, %cst_19 {dimension_numbers = #tpu.dot_dimension_numbers<[1], [0], [0], [1], [0, 0, 1, 1], [], []>} : vector<1x32xf32>, vector<32x32xf32>, vector<1x32xf32> -> vector<1x32xf32>
    %c0_20 = arith.constant 0 : index
    %c0_21 = arith.constant 0 : index
    %16 = vector.load %arg9[%c0_20, %c0_21] : memref<1x32xf32, #tpu.memory_space<vmem>>, vector<1x32xf32>
    %17 = arith.addf %15, %16 : vector<1x32xf32>
    %18 = arith.mulf %11, %11 : vector<1x32xf32>
    %c0_22 = arith.constant 0 : index
    %c0_23 = arith.constant 0 : index
    %19 = vector.load %arg11[%c0_22, %c0_23] : memref<32x32xf32, #tpu.memory_space<vmem>>, vector<32x32xf32>
    %cst_24 = arith.constant dense<0.000000e+00> : vector<1x32xf32>
    %20 = tpu.matmul %18, %19, %cst_24 {dimension_numbers = #tpu.dot_dimension_numbers<[1], [0], [0], [1], [0, 0, 1, 1], [], []>} : vector<1x32xf32>, vector<32x32xf32>, vector<1x32xf32> -> vector<1x32xf32>
    %cst_25 = arith.constant 9.99999993E-9 : f32
    %21 = vector.broadcast %cst_25 : f32 to vector<1x32xf32>
    %22 = arith.addf %20, %21 : vector<1x32xf32>
    %23 = math.rsqrt %22 : vector<1x32xf32>
    %24 = vector.broadcast %11 : vector<1x32xf32> to vector<64x32xf32>
    %25 = arith.mulf %5, %24 : vector<64x32xf32>
    %cst_26 = arith.constant 0.000000e+00 : f32
    %26 = vector.broadcast %cst_26 : f32 to vector<10x10x32xf32>
    %c0_27 = arith.constant 0 : index
    %c0_28 = arith.constant 0 : index
    %c0_29 = arith.constant 0 : index
    %27 = vector.load %arg17[%c0_27, %c0_28, %c0_29] : memref<10x10x32xf32, #tpu.memory_space<vmem>>, vector<10x10x32xf32>
    tpu.vector_store %arg17[%c0_27, %c0_28, %c0_29], %26 {strides = array<i32>} : memref<10x10x32xf32, #tpu.memory_space<vmem>>, vector<10x10x32xf32>,
    %28 = vector.shape_cast %25 : vector<64x32xf32> to vector<8x8x32xf32>
    %c1 = arith.constant 1 : index
    %c1_30 = arith.constant 1 : index
    %c0_31 = arith.constant 0 : index
    %29 = vector.load %arg17[%c1, %c1_30, %c0_31] : memref<10x10x32xf32, #tpu.memory_space<vmem>>, vector<8x8x32xf32>
    tpu.vector_store %arg17[%c1, %c1_30, %c0_31], %28 {strides = array<i32>} : memref<10x10x32xf32, #tpu.memory_space<vmem>>, vector<8x8x32xf32>,
    %c0_32 = arith.constant 0 : index
    %c0_33 = arith.constant 0 : index
    %c0_34 = arith.constant 0 : index
    %30 = vector.load %arg17[%c0_32, %c0_33, %c0_34] : memref<10x10x32xf32, #tpu.memory_space<vmem>>, vector<10x10x32xf32>
    %31 = vector.extract_strided_slice %30 {offsets = [0, 0, 0], sizes = [8, 8, 32], strides = [1, 1, 1]} : vector<10x10x32xf32> to vector<8x8x32xf32>
    %32 = vector.shape_cast %31 : vector<8x8x32xf32> to vector<64x32xf32>
    %33 = vector.extract_strided_slice %30 {offsets = [0, 1, 0], sizes = [8, 8, 32], strides = [1, 1, 1]} : vector<10x10x32xf32> to vector<8x8x32xf32>
    %34 = vector.shape_cast %33 : vector<8x8x32xf32> to vector<64x32xf32>
    %35 = vector.extract_strided_slice %30 {offsets = [0, 2, 0], sizes = [8, 8, 32], strides = [1, 1, 1]} : vector<10x10x32xf32> to vector<8x8x32xf32>
    %36 = vector.shape_cast %35 : vector<8x8x32xf32> to vector<64x32xf32>
    %37 = vector.extract_strided_slice %30 {offsets = [1, 0, 0], sizes = [8, 8, 32], strides = [1, 1, 1]} : vector<10x10x32xf32> to vector<8x8x32xf32>
    %38 = vector.shape_cast %37 : vector<8x8x32xf32> to vector<64x32xf32>
    %39 = vector.extract_strided_slice %30 {offsets = [1, 1, 0], sizes = [8, 8, 32], strides = [1, 1, 1]} : vector<10x10x32xf32> to vector<8x8x32xf32>
    %40 = vector.shape_cast %39 : vector<8x8x32xf32> to vector<64x32xf32>
    %41 = vector.extract_strided_slice %30 {offsets = [1, 2, 0], sizes = [8, 8, 32], strides = [1, 1, 1]} : vector<10x10x32xf32> to vector<8x8x32xf32>
    %42 = vector.shape_cast %41 : vector<8x8x32xf32> to vector<64x32xf32>
    %43 = vector.extract_strided_slice %30 {offsets = [2, 0, 0], sizes = [8, 8, 32], strides = [1, 1, 1]} : vector<10x10x32xf32> to vector<8x8x32xf32>
    %44 = vector.shape_cast %43 : vector<8x8x32xf32> to vector<64x32xf32>
    %45 = vector.extract_strided_slice %30 {offsets = [2, 1, 0], sizes = [8, 8, 32], strides = [1, 1, 1]} : vector<10x10x32xf32> to vector<8x8x32xf32>
    %46 = vector.shape_cast %45 : vector<8x8x32xf32> to vector<64x32xf32>
    %47 = vector.extract_strided_slice %30 {offsets = [2, 2, 0], sizes = [8, 8, 32], strides = [1, 1, 1]} : vector<10x10x32xf32> to vector<8x8x32xf32>
    %48 = vector.shape_cast %47 : vector<8x8x32xf32> to vector<64x32xf32>
    %49 = tpu.concatenate %32, %34, %36, %38, %40, %42, %44, %46, %48 in 1 : vector<64x32xf32>, vector<64x32xf32>, vector<64x32xf32>, vector<64x32xf32>, vector<64x32xf32>, vector<64x32xf32>, vector<64x32xf32>, vector<64x32xf32>, vector<64x32xf32> -> vector<64x288xf32>
    %50 = arith.truncf %49 : vector<64x288xf32> to vector<64x288xbf16>
    %c0_35 = arith.constant 0 : index
    %c0_36 = arith.constant 0 : index
    %51 = vector.load %arg10[%c0_35, %c0_36] : memref<288x32xbf16, #tpu.memory_space<vmem>>, vector<288x32xbf16>
    %cst_37 = arith.constant dense<0.000000e+00> : vector<64x32xf32>
    %52 = tpu.matmul %50, %51, %cst_37 {dimension_numbers = #tpu.dot_dimension_numbers<[1], [0], [0], [1], [0, 0, 1, 1], [], []>} : vector<64x288xbf16>, vector<288x32xbf16>, vector<64x32xf32> -> vector<64x32xf32>
    %53 = vector.broadcast %23 : vector<1x32xf32> to vector<64x32xf32>
    %54 = arith.mulf %52, %53 : vector<64x32xf32>
    %c0_38 = arith.constant 0 : index
    %c0_39 = arith.constant 0 : index
    %55 = vector.load %arg12[%c0_38, %c0_39] : memref<1x32xf32, #tpu.memory_space<vmem>>, vector<1x32xf32>
    %56 = vector.broadcast %55 : vector<1x32xf32> to vector<64x32xf32>
    %57 = arith.addf %54, %56 : vector<64x32xf32>
    %cst_40 = arith.constant 0.000000e+00 : f32
    %58 = vector.broadcast %cst_40 : f32 to vector<64x32xf32>
    %59 = arith.cmpf oge, %57, %58 : vector<64x32xf32>
    %cst_41 = arith.constant 2.000000e-01 : f32
    %60 = vector.broadcast %cst_41 : f32 to vector<64x32xf32>
    %61 = arith.mulf %60, %57 : vector<64x32xf32>
    %62 = arith.select %59, %57, %61 : vector<64x32xi1>, vector<64x32xf32>
    %cst_42 = arith.constant 1.41421354 : f32
    %63 = vector.broadcast %cst_42 : f32 to vector<64x32xf32>
    %64 = arith.mulf %62, %63 : vector<64x32xf32>
    %c0_43 = arith.constant 0 : index
    %c0_44 = arith.constant 0 : index
    %c0_45 = arith.constant 0 : index
    %65 = vector.load %arg15[%c0_43, %c0_44, %c0_45] : memref<1x64x32xf32, #tpu.memory_space<vmem>>, vector<1x64x32xf32>
    %66 = vector.shape_cast %65 : vector<1x64x32xf32> to vector<64x32xf32>
    %67 = vector.shape_cast %64 : vector<64x32xf32> to vector<1x64x32xf32>
    tpu.vector_store %arg15[%c0_43, %c0_44, %c0_45], %67 {strides = array<i32>} : memref<1x64x32xf32, #tpu.memory_space<vmem>>, vector<1x64x32xf32>,
    %68 = vector.broadcast %17 : vector<1x32xf32> to vector<64x32xf32>
    %69 = arith.mulf %64, %68 : vector<64x32xf32>
    %c0_46 = arith.constant 0 : index
    %c0_47 = arith.constant 0 : index
    %70 = vector.load %arg13[%c0_46, %c0_47] : memref<32x3xf32, #tpu.memory_space<vmem>>, vector<32x3xf32>
    %cst_48 = arith.constant dense<0.000000e+00> : vector<64x3xf32>
    %71 = tpu.matmul %69, %70, %cst_48 {dimension_numbers = #tpu.dot_dimension_numbers<[1], [0], [0], [1], [0, 0, 1, 1], [], []>} : vector<64x32xf32>, vector<32x3xf32>, vector<64x3xf32> -> vector<64x3xf32>
    %c0_49 = arith.constant 0 : index
    %c0_50 = arith.constant 0 : index
    %72 = vector.load %arg14[%c0_49, %c0_50] : memref<1x3xf32, #tpu.memory_space<vmem>>, vector<1x3xf32>
    %73 = vector.broadcast %72 : vector<1x3xf32> to vector<64x3xf32>
    %74 = arith.addf %71, %73 : vector<64x3xf32>
    %c0_51 = arith.constant 0 : index
    %c0_52 = arith.constant 0 : index
    %c0_53 = arith.constant 0 : index
    %75 = vector.load %arg16[%c0_51, %c0_52, %c0_53] : memref<1x64x3xf32, #tpu.memory_space<vmem>>, vector<1x64x3xf32>
    %76 = vector.shape_cast %75 : vector<1x64x3xf32> to vector<64x3xf32>
    %77 = vector.shape_cast %74 : vector<64x3xf32> to vector<1x64x3xf32>
    tpu.vector_store %arg16[%c0_51, %c0_52, %c0_53], %77 {strides = array<i32>} : memref<1x64x3xf32, #tpu.memory_space<vmem>>, vector<1x64x3xf32>,
    return
  }
  func.func @transform_0(%arg0: i32) -> (i32, i32) {
    %c0_i32 = arith.constant 0 : i32
    %c0_i32_0 = arith.constant 0 : i32
    %c0_i32_1 = arith.constant 0 : i32
    return %c0_i32, %c0_i32_0 : i32, i32
  }
  func.func @transform_1(%arg0: i32) -> (i32, i32, i32) {
    %c0_i32 = arith.constant 0 : i32
    %c0_i32_0 = arith.constant 0 : i32
    %c0_i32_1 = arith.constant 0 : i32
    return %arg0, %c0_i32, %c0_i32_0 : i32, i32, i32
  }
  func.func @transform_2(%arg0: i32) -> (i32, i32) {
    %c0_i32 = arith.constant 0 : i32
    %c0_i32_0 = arith.constant 0 : i32
    %c0_i32_1 = arith.constant 0 : i32
    return %c0_i32, %c0_i32_0 : i32, i32
  }
  func.func @transform_3(%arg0: i32) -> (i32, i32, i32) {
    %c0_i32 = arith.constant 0 : i32
    %c0_i32_0 = arith.constant 0 : i32
    %c0_i32_1 = arith.constant 0 : i32
    return %arg0, %c0_i32, %c0_i32_0 : i32, i32, i32
  }
  func.func @transform_4(%arg0: i32) -> (i32, i32, i32) {
    %c0_i32 = arith.constant 0 : i32
    %c0_i32_0 = arith.constant 0 : i32
    %c0_i32_1 = arith.constant 0 : i32
    return %arg0, %c0_i32, %c0_i32_0 : i32, i32, i32
  }
  func.func @transform_5(%arg0: i32) -> (i32, i32) {
    %c0_i32 = arith.constant 0 : i32
    %c0_i32_0 = arith.constant 0 : i32
    %c0_i32_1 = arith.constant 0 : i32
    return %c0_i32, %c0_i32_0 : i32, i32
  }
  func.func @transform_6(%arg0: i32) -> (i32, i32) {
    %c0_i32 = arith.constant 0 : i32
    %c0_i32_0 = arith.constant 0 : i32
    %c0_i32_1 = arith.constant 0 : i32
    return %c0_i32, %c0_i32_0 : i32, i32
  }
  func.func @transform_7(%arg0: i32) -> (i32, i32) {
    %c0_i32 = arith.constant 0 : i32
    %c0_i32_0 = arith.constant 0 : i32
    %c0_i32_1 = arith.constant 0 : i32
    return %c0_i32, %c0_i32_0 : i32, i32
  }
  func.func @transform_8(%arg0: i32) -> (i32, i32) {
    %c0_i32 = arith.constant 0 : i32
    %c0_i32_0 = arith.constant 0 : i32
    %c0_i32_1 = arith.constant 0 : i32
    return %c0_i32, %c0_i32_0 : i32, i32
  }
  func.func @transform_9(%arg0: i32) -> (i32, i32) {
    %c0_i32 = arith.constant 0 : i32
    %c0_i32_0 = arith.constant 0 : i32
    %c0_i32_1 = arith.constant 0 : i32
    return %c0_i32, %c0_i32_0 : i32, i32
  }
  func.func @transform_10(%arg0: i32) -> (i32, i32) {
    %c0_i32 = arith.constant 0 : i32
    %c0_i32_0 = arith.constant 0 : i32
    %c0_i32_1 = arith.constant 0 : i32
    return %c0_i32, %c0_i32_0 : i32, i32
  }
  func.func @transform_11(%arg0: i32) -> (i32, i32) {
    %c0_i32 = arith.constant 0 : i32
    %c0_i32_0 = arith.constant 0 : i32
    %c0_i32_1 = arith.constant 0 : i32
    return %c0_i32, %c0_i32_0 : i32, i32
  }
  func.func @transform_12(%arg0: i32) -> (i32, i32) {
    %c0_i32 = arith.constant 0 : i32
    %c0_i32_0 = arith.constant 0 : i32
    %c0_i32_1 = arith.constant 0 : i32
    return %c0_i32, %c0_i32_0 : i32, i32
  }
  func.func @transform_13(%arg0: i32) -> (i32, i32) {
    %c0_i32 = arith.constant 0 : i32
    %c0_i32_0 = arith.constant 0 : i32
    %c0_i32_1 = arith.constant 0 : i32
    return %c0_i32, %c0_i32_0 : i32, i32
  }
  func.func @transform_14(%arg0: i32) -> (i32, i32, i32) {
    %c0_i32 = arith.constant 0 : i32
    %c0_i32_0 = arith.constant 0 : i32
    %c0_i32_1 = arith.constant 0 : i32
    return %arg0, %c0_i32, %c0_i32_0 : i32, i32, i32
  }
  func.func @transform_15(%arg0: i32) -> (i32, i32, i32) {
    %c0_i32 = arith.constant 0 : i32
    %c0_i32_0 = arith.constant 0 : i32
    %c0_i32_1 = arith.constant 0 : i32
    return %arg0, %c0_i32, %c0_i32_0 : i32, i32, i32
  }
}

</mosaic_0001>

<bundles_post_ra>
// kernel: fwd.1
= control target key start
LH: loop header
LB: loop body
LE: loop exit
PB: predicated region body
PF: predicated region fallthrough
CT: control target
= control target key end

     0   :  { %s3246_s0 = inlined_call_operand.vmem [shape: f32[64,32], index: 0, kind: input, shape index: {}]   ;;  %s3247_s1 = inlined_call_operand.vmem [shape: f32[2,64,32], index: 1, kind: input, shape index: {}]   ;;  %s3248_s2 = inlined_call_operand.vmem [shape: f32[32,32], index: 2, kind: input, shape index: {}]   ;;  %s3249_s3 = inlined_call_operand.vmem [shape: f32[2,1,32], index: 3, kind: input, shape index: {}]   ;;  %s3250_s4 = inlined_call_operand.vmem [shape: f32[2,1,32], index: 4, kind: input, shape index: {}]   ;;  %s3251_s5 = inlined_call_operand.vmem [shape: f32[32,32], index: 5, kind: input, shape index: {}]   ;;  %s3252_s6 = inlined_call_operand.vmem [shape: f32[1,32], index: 6, kind: input, shape index: {}]   ;;  %s3253_s7 = inlined_call_operand.vmem [shape: f32[32,32], index: 7, kind: input, shape index: {}]   ;;  %s3254_s8 = inlined_call_operand.vmem [shape: f32[1,32], index: 8, kind: input, shape index: {}]   ;;  %s3255_s9 = inlined_call_operand.vmem [shape: bf16[288,32], index: 9, kind: input, shape index: {}]   ;;  %s3256_s10 = inlined_call_operand.vmem [shape: f32[32,32], index: 10, kind: input, shape index: {}]   ;;  %s3257_s11 = inlined_call_operand.vmem [shape: f32[1,32], index: 11, kind: input, shape index: {}]   ;;  %s3258_s12 = inlined_call_operand.vmem [shape: f32[32,3], index: 12, kind: input, shape index: {}]   ;;  %s3259_s13 = inlined_call_operand.vmem [shape: f32[1,3], index: 13, kind: input, shape index: {}]   ;;  %s3260_s14 = inlined_call_operand.hbm [shape: f32[2,64,32], index: 14, kind: output, shape index: {0}]   ;;  %s3261_s15 = inlined_call_operand.vmem [shape: f32[2,64,3], index: 15, kind: output, shape index: {1}]  }
   0x1   :  { %3268 = sst [smem:[#allocation11_spill]] %s3248_s2 }
   0x2   :  { %21 = vsyncpa [#allocation4], 0 }
   0x3   :  { %23 = vsyncpa [#allocation4 + $0x1], 0  ;;  %s2541_s18 = smov 0   ;;  %s2543_s19 = smov 0  }
   0x4   :  { %s2545_s20 = smov 0   ;;  %s2547_s21 = smov 0  }
   0x5 LB: > { %3269 = sst [smem:[#allocation6_spill]] %s2438_s18  ;;  %s2562_s22 = sadd.s32 4294967295, %s2450_s21   ;;  %s2450_s21 = sphi %s2547_s21, %s3280_s21   ;;  %s2446_s20 = sphi %s2545_s20, %s3282_s20   ;;  %s2442_s19 = sphi %s2543_s19, %s3284_s19   ;;  %s2438_s18 = sphi %s2541_s18, %s3283_s18  }
   0x6   : > { %3270 = sst [smem:[#allocation7_spill]] %s2446_s20  ;;  %s1937_s23 = sadd.s32 4294967294, %s2450_s21  }
   0x7   : > { %s2566_s24 = sadd.s32 1, %s2450_s21   ;;  %s345_s25 = sadd.s32 1, %s2446_s20 }
   0x8   : > { %3271 = sst [smem:[#allocation8_spill]] %s2566_s24  ;;  %s342_s26 = ssub.s32 %s2450_s21, %s2566_s24 }
   0x9   : > { %p355_p0 = scmp.ne.s32.totalorder %s2446_s20, %s2442_s19  ;;  %p343_p1 = scmp.eq.s32.totalorder %s342_s26, 0 }
   0xa   : > { %p356_p2 = scmp.eq.s32.totalorder %s2562_s22, 1  ;;  %p361_p3 = scmp.ne.s32.totalorder %s2442_s19, %s2438_s18 }
   0xb   : > { %p362_p4 = scmp.eq.s32.totalorder %s1937_s23, 1  ;;  %p1940_p7 = scmp.ge.s32.totalorder %s2450_s21, 1 }
   0xc   : > { %s2577_s27 = scalar_select %p343_p1, %s2446_s20, %s345_s25  }
   0xd   : > { %p2579_p5 = por %p356_p2, %p355_p0  ;;  %p2583_p6 = por %p362_p4, %p361_p3 }
   0xe   : > { %3272 = sst [smem:[#allocation9_spill]] %s2577_s27  ;;  %p459_p8 = scmp.lt.s32.totalorder %s2450_s21, 3 }
   0xf   : > { %s3274_s29 = scalar_select %p2583_p6, 1, 0 }
  0x10   : > { %p460_p9 = pnand %p1940_p7, %p459_p8 }
  0x11   : > { %3275 = sst [smem:[#allocation10_spill]] %s3274_s29  ;;  %s3276_s2 = sld [smem:[#allocation11_spill]] (!%p460_p9)  ;;  %vm555_vm0 = vcmask (!%p460_p9), 261120   ;;  %v2452_v5 = vmov (!%p460_p9), 0.0|0.0   ;;  %v2453_v7 = vmov (!%p460_p9), 0.0   ;;  %vm2454_vm1 = vmmov (!%p460_p9), 0  }
  0x12   : > { %463 = sbr.rel (%p460_p9) target bundleno = 891 (0x37b), region = 76  ;;  %p518_p10 = scmp.lt.s32.totalorder (!%p460_p9), %s2562_s22, 1  ;;  %2181 = vmatprep.subr.bf16.mxu1 (!%p460_p9), %v2452_v5  ;;  %942 = vst.msk [vmem:[#allocation2] sm:$0xff] (!%p460_p9), %vm555_vm0, %v2453_v7  ;;  %945 = vst.msk [vmem:[#allocation2 + $0x10] sm:$0xff] (!%p460_p9), %vm555_vm0, %v2453_v7  ;;  %2121 = vmatprep.mubr.msk.f32.mxu1 (!%p460_p9), %vm2454_vm1, %v2453_v7  ;;  %v694_v8 = vld [vmem:[%s3251_s5] sm:$0xff] (!%p460_p9)  ;;  %v695_v9 = vld [vmem:[%s3251_s5 + $0x8] sm:$0xff] (!%p460_p9)  ;;  %v930_v45 = vlaneseq (!%p460_p9) }
  0x13   : > { %947 = vst.msk [vmem:[#allocation2 + $0x20] sm:$0xff] (!%p460_p9), %vm555_vm0, %v2453_v7  ;;  %949 = vst.msk [vmem:[#allocation2 + $0x30] sm:$0xff] (!%p460_p9), %vm555_vm0, %v2453_v7  ;;  %v696_v11 = vld [vmem:[%s3251_s5 + $0x10] sm:$0xff] (!%p460_p9)  ;;  %v697_v12 = vld [vmem:[%s3251_s5 + $0x18] sm:$0xff] (!%p460_p9)  ;;  %v2176_v14 = vpack.c.bf16 (!%p460_p9), %v695_v9, %v694_v8  ;;  %vm943_vm2 = vcmask (!%p460_p9), 254976   ;;  %vm1033_vm3 = vcmask (!%p460_p9), 1045504  }
  0x14   : > { %951 = vst.msk [vmem:[#allocation2 + $0x40] sm:$0xff] (!%p460_p9), %vm555_vm0, %v2453_v7  ;;  %953 = vst.msk [vmem:[#allocation2 + $0x50] sm:$0xff] (!%p460_p9), %vm555_vm0, %v2453_v7  ;;  %v2179_v18 = vpack.c.bf16 (!%p460_p9), %v697_v12, %v696_v11  ;;  %v852_v23 = vld [vmem:[%s3256_s10] sm:$0xff] (!%p460_p9)  ;;  %v853_v24 = vld [vmem:[%s3256_s10 + $0x8] sm:$0xff] (!%p460_p9)  ;;  %v931_v48 = vshrl.u32 (!%p460_p9), %v930_v45, 7  ;;  %s2455_s18 = smov (!%p460_p9), 64  }
  0x15   : > { %955 = vst.msk [vmem:[#allocation2 + $0x60] sm:$0xff] (!%p460_p9), %vm555_vm0, %v2453_v7  ;;  %957 = vst.msk [vmem:[#allocation2 + $0x70] sm:$0xff] (!%p460_p9), %vm555_vm0, %v2453_v7  ;;  %v2188_v25 = vpack.c.bf16 (!%p460_p9), %v853_v24, %v852_v23  ;;  %v854_v26 = vld [vmem:[%s3256_s10 + $0x10] sm:$0xff] (!%p460_p9)  ;;  %v855_v27 = vld [vmem:[%s3256_s10 + $0x18] sm:$0xff] (!%p460_p9)  ;;  %s2456_s23 = smov (!%p460_p9), 96   ;;  %vm1008_vm4 = vcmask (!%p460_p9), 1046528  }
  0x16   : > { %959 = vst.msk [vmem:[#allocation2 + $0x80] sm:$0xff] (!%p460_p9), %vm555_vm0, %v2453_v7  ;;  %961 = vst.msk [vmem:[#allocation2 + $0x90] sm:$0xff] (!%p460_p9), %vm555_vm0, %v2453_v7  ;;  %v2191_v28 = vpack.c.bf16 (!%p460_p9), %v855_v27, %v854_v26  ;;  %v2682_v29 = vld [vmem:[%s3255_s9 + $0x80] sm:$0xff] (!%p460_p9)   ;;  %v774_v31 = vld [vmem:[%s3253_s7 + $0x8] sm:$0xff] (!%p460_p9)  ;;  %v2734_v54 = vsub.s32 (!%p460_p9), 0, %v931_v48  ;;  %vm1242_vm5 = vcmask (!%p460_p9), 523264  }
  0x17   : > { %v551_v0 = vld [vmem:[%s3276_s2] sm:$0xff] (!%p460_p9)  ;;  %v552_v1 = vld [vmem:[%s3276_s2 + $0x8] sm:$0xff] (!%p460_p9)  ;;  %v553_v2 = vld [vmem:[%s3276_s2 + $0x10] sm:$0xff] (!%p460_p9)  ;;  %952 = vst.msk [vmem:[#allocation2 + $0x48] sm:$0x3] (!%p460_p9), %vm943_vm2, %v2453_v7  ;;  %vm1251_vm6 = vcmask (!%p460_p9), 785408  }
  0x18   : > { %v2167_v3 = vpack.c.bf16 (!%p460_p9), %v552_v1, %v551_v0  ;;  %v554_v4 = vld [vmem:[%s3276_s2 + $0x18] sm:$0xff] (!%p460_p9)  ;;  %954 = vst.msk [vmem:[#allocation2 + $0x58] sm:$0x3] (!%p460_p9), %vm943_vm2, %v2453_v7  ;;  %944 = vst.msk [vmem:[#allocation2 + $0x8] sm:$0x3] (!%p460_p9), %vm943_vm2, %v2453_v7  ;;  %v773_v30 = vld [vmem:[%s3253_s7] sm:$0xff] (!%p460_p9) }
  0x19   : > { %v2171_v6 = vpack.c.bf16 %v554_v4, %v553_v2  ;;  %s2604_s30 = scalar_select %p518_p10, %s2562_s22, 1  ;;  %946 = vst.msk [vmem:[#allocation2 + $0x18] sm:$0x3] %vm943_vm2, %v2453_v7  ;;  %948 = vst.msk [vmem:[#allocation2 + $0x28] sm:$0x3] %vm943_vm2, %v2453_v7  ;;  %v775_v32 = vld [vmem:[%s3253_s7 + $0x10] sm:$0xff]  ;;  %v2182_v33 = vpack.c.bf16 %v774_v31, %v773_v30 }
  0x1a   : > { %2168 = vmatprep.subr.bf16.mxu0 %v2167_v3  ;;  %950 = vst.msk [vmem:[#allocation2 + $0x38] sm:$0x3] %vm943_vm2, %v2453_v7  ;;  %956 = vst.msk [vmem:[#allocation2 + $0x68] sm:$0x3] %vm943_vm2, %v2453_v7  ;;  %v776_v34 = vld [vmem:[%s3253_s7 + $0x18] sm:$0xff]  ;;  %v2370_v36 = vld [vmem:[%s3255_s9 + $0x40] sm:$0xff]  }
  0x1b   : > { %2170 = vmatpush3.bf16.msra.mxu0 %v2167_v3  ;;  %s3267_s20 = sshll.u32 %s2604_s30, 6  ;;  %s525_s24 = scalar_lea.vmem %s3249_s3, %s2604_s30  ;;  %958 = vst.msk [vmem:[#allocation2 + $0x78] sm:$0x3] %vm943_vm2, %v2453_v7  ;;  %960 = vst.msk [vmem:[#allocation2 + $0x88] sm:$0x3] %vm943_vm2, %v2453_v7  ;;  %2183 = vmatpush3.bf16.msra.mxu1 %v2182_v33  ;;  %v2185_v35 = vpack.c.bf16 %v776_v34, %v775_v32  ;;  %v2371_v38 = vld [vmem:[%s3255_s9] sm:$0xff]  }
  0x1c   : > { %2172 = vmatprep.subr.bf16.mxu0 %v2171_v6  ;;  %s522_s25 = scalar_lea.vmem %s3247_s1, %s3267_s20  ;;  %v693_v22 = vld [vmem:[%s525_s24] sm:$0x1]  ;;  %962 = vst.msk [vmem:[#allocation2 + $0x98] sm:$0x3] %vm943_vm2, %v2453_v7  ;;  %2184 = vmatprep.subr.bf16.mxu1 %v2452_v5  ;;  %s528_s17 = scalar_lea.vmem %s3250_s4, %s2604_s30  ;;  %v2372_v39 = vld [vmem:[%s3255_s9 + $0x48] sm:$0xff]   ;;  %v538_v55 = vld [vmem:[%s3246_s0 + $0x18] sm:$0xff] }
  0x1d   : > { %v543_v10 = vld [vmem:[%s522_s25] sm:$0xff]  ;;  %v544_v13 = vld [vmem:[%s522_s25 + $0x8] sm:$0xff]  ;;  %v545_v15 = vld [vmem:[%s522_s25 + $0x10] sm:$0xff]  ;;  %s1996_s27 = sshll.u32 %s2562_s22, 10  ;;  %s2458_s22 = smov [#allocation3]  }
  0x1e   : > { %2090 = vmatprep.mubr.msk.f32.mxu0 %vm555_vm0, %v543_v10  ;;  %v546_v16 = vld [vmem:[%s522_s25 + $0x18] sm:$0xff]  ;;  %v547_v17 = vld [vmem:[%s522_s25 + $0x20] sm:$0xff]  ;;  %v548_v19 = vld [vmem:[%s522_s25 + $0x28] sm:$0xff]  ;;  %s3183_s29 = scalar_lea.hbm %s3260_s14, %s1996_s27 }
  0x1f   : > { %2174 = vmatpush3.bf16.msra.mxu0 %v2171_v6  ;;  %v549_v20 = vld [vmem:[%s522_s25 + $0x30] sm:$0xff]  ;;  %v550_v21 = vld [vmem:[%s522_s25 + $0x38] sm:$0xff]  ;;  %2186 = vmatpush3.bf16.msra.mxu1 %v2185_v35  ;;  %v772_v37 = vld [vmem:[%s528_s17] sm:$0x1]  ;;  %s2457_s17 = smov 32  }
  0x20   : > { %2175 = vmatprep.subr.bf16.mxu0 %v2452_v5  ;;  %2024 = vmatprep.subr.bf16.mxu1 %v2370_v36  ;;  %v2373_v40 = vld [vmem:[%s3255_s9 + $0x8] sm:$0xff]   ;;  %v698_v51 = vld [vmem:[%s3252_s6] sm:$0x1]  ;;  %v537_v56 = vld [vmem:[%s3246_s0 + $0x10] sm:$0xff] }
  0x21   : > { %v536_v52 = vld [vmem:[%s3246_s0 + $0x8] sm:$0xff]  ;;  %v535_v53 = vld [vmem:[%s3246_s0] sm:$0xff]  ;;  %v542_v60 = vld [vmem:[%s3246_s0 + $0x38] sm:$0xff] }
  0x22   : > { %2091 = vmatmul.mubr.msk.f32.vlgmr.msra.gmra.mrb[0].mxu0 %vm555_vm0, %v544_v13  ;;  %2122 = vmatmul.mubr.msk.f32.vlgmr.msra.gmra.mrb[0].mxu1 %vm555_vm0, %v772_v37  ;;  %v540_v57 = vld [vmem:[%s3246_s0 + $0x28] sm:$0xff]  ;;  %v539_v59 = vld [vmem:[%s3246_s0 + $0x20] sm:$0xff]  ;;  %v541_v61 = vld [vmem:[%s3246_s0 + $0x30] sm:$0xff] }
  0x23   : > { %2177 = vmatpush3.bf16.msra.mxu0 %v2176_v14  ;;  %2093 = vmatprep.mubr.msk.f32.mxu0 %vm555_vm0, %v545_v15  ;;  %v2369_v6 = vld [vmem:[%s3255_s9 + $0x88] sm:$0xff]   ;;  %v2374_v15 = vld [vmem:[%s3255_s9 + $0x50] sm:$0xff]   ;;  %v2378_v24 = vld [vmem:[%s3255_s9 + $0x60] sm:$0xff]  }
  0x24   : > { %2178 = vmatprep.subr.bf16.mxu0 %v2452_v5  ;;  %2025 = vmatpush3.bf16.msra.mxu1 %v2371_v38  ;;  %v2780_v23 = vld [vmem:[#allocation2 + $0x90] sm:$0xff] }
  0x25   : > { %2026 = vmatprep.subr.bf16.mxu1 %v2372_v39 }
  0x26   : > { %2094 = vmatmul.mubr.msk.f32.gmra.mrb[2].mxu0 %vm555_vm0, %v546_v16  ;;  %v2375_v16 = vld [vmem:[%s3255_s9 + $0x10] sm:$0xff]  }
  0x27   : > { %2096 = vmatprep.mubr.msk.f32.mxu0 %vm555_vm0, %v547_v17  ;;  %2180 = vmatpush3.bf16.msra.mxu0 %v2179_v18 }
  0x28   : > { %2187 = vmatprep.subr.bf16.mxu0 %v2452_v5  ;;  %2027 = vmatpush3.bf16.msra.mxu1 %v2373_v40 }
  0x29   : > { %2028 = vmatprep.subr.bf16.mxu1 %v2374_v15 }
  0x2a   : > { %2097 = vmatmul.mubr.msk.f32.gmra.mrb[4].mxu0 %vm555_vm0, %v548_v19 }
  0x2b   : > { %2099 = vmatprep.mubr.msk.f32.mxu0 %vm555_vm0, %v549_v20 }
  0x2c   : > { %2029 = vmatpush3.bf16.msra.mxu1 %v2375_v16 }
  0x2e   : > { %2100 = vmatmul.mubr.msk.f32.gmra.mrb[6].mxu0 %vm555_vm0, %v550_v21  ;;  %v2376_v21 = vld [vmem:[%s3255_s9 + $0x58] sm:$0xff]  }
  0x2f   : > { %2110 = vmatprep.mubr.msk.f32.mxu0 %vm2454_vm1, %v2453_v7  ;;  %2030 = vmatprep.subr.bf16.mxu1 %v2376_v21  ;;  %v2383_v21 = vld [vmem:[%s3255_s9 + $0x30] sm:$0xff]  }
  0x32   : > { %2111 = vmatmul.mubr.msk.f32.vlgmr.msra.gmra.mrb[8].mxu0 %vm555_vm0, %v693_v22  ;;  %v2377_v22 = vld [vmem:[%s3255_s9 + $0x18] sm:$0xff]  }
  0x33   : > { %2132 = vmatprep.mubr.msk.f32.mxu0 %vm2454_vm1, %v2453_v7  ;;  %2189 = vmatpush3.bf16.msra.mxu0 %v2188_v25  ;;  %v2379_v25 = vld [vmem:[%s3255_s9 + $0x20] sm:$0xff]  }
  0x34   : > { %2190 = vmatprep.subr.bf16.mxu0 %v2452_v5  ;;  %2031 = vmatpush3.bf16.msra.mxu1 %v2377_v22 }
  0x35   : > { %2032 = vmatprep.subr.bf16.mxu1 %v2378_v24 }
  0x37   : > { %2192 = vmatpush3.bf16.msra.mxu0 %v2191_v28 }
  0x38   : > { %2135 = vmatprep.subr.bf16.mxu0 %v2682_v29  ;;  %2033 = vmatpush3.bf16.msra.mxu1 %v2379_v25 }
  0xf5   : > { %v2092_v41 = vpop.f32.mrb[0].mxu0 }
  0xf6   : > { %v646_v42 = vpop.f32.mrb[1].mxu0  ;;  %v686_v0 = vadd.f32 %v2092_v41, %v536_v52 }
  0xf7   : > { %v685_v1 = vadd.f32 %v646_v42, %v535_v53  ;;  %v2814_v42 = vld [vmem:[#allocation2 + $0x98] sm:$0x3] }
  0xf9   : > { %v2095_v43 = vpop.f32.mrb[2].mxu0 }
  0xfa   : > { %v656_v44 = vpop.f32.mrb[3].mxu0  ;;  %v688_v2 = vadd.f32 %v2095_v43, %v538_v55  ;;  %v2838_v55 = vld [vmem:[#allocation2] sm:$0xff] }
  0xfb   : > { %v687_v3 = vadd.f32 %v656_v44, %v537_v56  ;;  %v973_v56 = vld [vmem:[#allocation2 + $0x8] sm:$0x3]  ;;  %v1034_v16 = vrot.slane %v2838_v55, 2 }
  0xfc   : > { %v1010_v24 = vrot.slane %v973_v56, 1 }
  0xfd   : > { %v2098_v46 = vpop.f32.mrb[4].mxu0 }
  0xfe   : > { %v666_v47 = vpop.f32.mrb[5].mxu0  ;;  %v690_v7 = vadd.f32 %v2098_v46, %v540_v57 }
  0xff   : > { %v689_v8 = vadd.f32 %v666_v47, %v539_v59 }
 0x101   : > { %v2101_v49 = vpop.f32.mrb[6].mxu0 }
 0x102   : > { %v676_v50 = vpop.f32.mrb[7].mxu0  ;;  %v692_v9 = vadd.f32 %v2101_v49, %v542_v60 }
 0x103   : > { %v691_v10 = vadd.f32 %v676_v50, %v541_v61 }
 0x105   : > { %v768_v58 = vpop.f32.mrb[8].mxu0 }
 0x106   : > { %v769_v62 = vadd.f32 %v768_v58, %v698_v51  ;;  %v2112_v63 = vpop.f32.mrb[9].mxu0 }
 0x108   : > { %v851_v4 = vmul.f32 %v769_v62, %v769_v62  ;;  %v933_v5 = vrot.slane %v769_v62, %v2734_v54 }
 0x10a   : > { %v934_v11 = vmul.f32 %v933_v5, %v685_v1  ;;  %v935_v12 = vmul.f32 %v933_v5, %v686_v0  ;;  %v936_v13 = vmul.f32 %v933_v5, %v687_v3  ;;  %v937_v14 = vmul.f32 %v933_v5, %v688_v2  ;;  %2133 = vmatmul.mubr.msk.f32.vlgmr.msra.gmra.mrb[10].mxu0 %vm555_vm0, %v851_v4  ;;  %v2380_v4 = vld [vmem:[%s3255_s9 + $0x68] sm:$0xff]  }
 0x10b   : > { %v938_v17 = vmul.f32 %v933_v5, %v689_v8  ;;  %v939_v18 = vmul.f32 %v933_v5, %v690_v7  ;;  %v940_v19 = vmul.f32 %v933_v5, %v691_v10  ;;  %v941_v20 = vmul.f32 %v933_v5, %v692_v9  ;;  %2136 = vmatpush3.bf16.msra.mxu0 %v2682_v29  ;;  %v2381_v5 = vld [vmem:[%s3255_s9 + $0x28] sm:$0xff]  }
 0x10c   : > { %967 = vst.msk [vmem:[#allocation2 + $0x41] sm:$0xff] %vm555_vm0, %v937_v14  ;;  %965 = vst.msk [vmem:[#allocation2 + $0x21] sm:$0xff] %vm555_vm0, %v935_v12  ;;  %2137 = vmatprep.subr.bf16.mxu0 %v2369_v6  ;;  %v1079_v29 = vrot.slane %v2780_v23, 2  ;;  %v1080_v9 = vrot.slane %v2814_v42, 2  ;;  %2034 = vmatprep.subr.bf16.mxu1 %v2380_v4 }
 0x10d   : > { %966 = vst.msk [vmem:[#allocation2 + $0x31] sm:$0xff] %vm555_vm0, %v936_v13  ;;  %964 = vst.msk [vmem:[#allocation2 + $0x11] sm:$0xff] %vm555_vm0, %v934_v11  ;;  %2035 = vmatpush3.bf16.msra.mxu1 %v2381_v5 }
 0x10e   : > { %968 = vst.msk [vmem:[#allocation2 + $0x51] sm:$0xff] %vm555_vm0, %v938_v17  ;;  %969 = vst.msk [vmem:[#allocation2 + $0x61] sm:$0xff] %vm555_vm0, %v939_v18  ;;  %v1035_v17 = vrot.slane %v973_v56, 2 }
 0x10f   : > { %970 = vst.msk [vmem:[#allocation2 + $0x71] sm:$0xff] %vm555_vm0, %v940_v19  ;;  %971 = vst.msk [vmem:[#allocation2 + $0x81] sm:$0xff] %vm555_vm0, %v941_v20  ;;  %2138 = vmatpush3.bf16.msra.mxu0 %v2369_v6  ;;  %v1009_v19 = vrot.slane %v2838_v55, 1  ;;  %v2382_v20 = vld [vmem:[%s3255_s9 + $0x70] sm:$0xff]  }
 0x110   : > { %2036 = vmatprep.subr.bf16.mxu1 %v2382_v20 }
 0x111   : > { %2037 = vmatpush3.bf16.msra.mxu1 %v2383_v21  ;;  %v1011_v56 = vsel %vm1008_vm4, %v1009_v19, %v1010_v24 }
 0x113   : > { %v2788_v26 = vld [vmem:[#allocation2 + $0x40] sm:$0xff]  ;;  %v2802_v35 = vld [vmem:[#allocation2 + $0x28] sm:$0x3] }
 0x114   : > { %v2790_v27 = vld [vmem:[#allocation2 + $0x20] sm:$0xff]  ;;  %v2792_v28 = vld [vmem:[#allocation2 + $0x30] sm:$0xff]  ;;  %v1046_v31 = vrot.slane %v2788_v26, 2  ;;  %v2807_v38 = vld [vmem:[#allocation2 + $0x38] sm:$0x3]  ;;  %v1041_v39 = vrot.slane %v2802_v35, 2 }
 0x115   : > { %v2795_v30 = vld [vmem:[#allocation2 + $0x50] sm:$0xff]  ;;  %v1043_v32 = vrot.slane %v2792_v28, 2  ;;  %v2248_v33 = vpack.i.bf16 %v2792_v28, %v2790_v27  ;;  %v1040_v34 = vrot.slane %v2790_v27, 2  ;;  %v2812_v41 = vld [vmem:[#allocation2 + $0x60] sm:$0xff]  ;;  %v1044_v43 = vrot.slane %v2807_v38, 2 }
 0x116   : > { %v1049_v36 = vrot.slane %v2795_v30, 2  ;;  %v2258_v37 = vpack.i.bf16 %v2795_v30, %v2788_v26  ;;  %v2810_v40 = vld [vmem:[#allocation2 + $0x10] sm:$0xff]  ;;  %v2820_v45 = vld [vmem:[#allocation2 + $0x48] sm:$0x3]  ;;  %v2822_v46 = vld [vmem:[#allocation2 + $0x58] sm:$0x3]  ;;  %v2263_v15 = vpack.i.bf16 %v2788_v26, %v2792_v28 }
 0x117   : > { %2249 = vrot.lane.b32.xlu1 %v2248_v33, %s2455_s18  ;;  %v2253_v44 = vpack.i.bf16 %v2790_v27, %v2810_v40  ;;  %v2824_v47 = vld [vmem:[#allocation2 + $0x70] sm:$0xff]  ;;  %v2828_v48 = vsel %vm1033_vm3, %v1040_v34, %v1041_v39  ;;  %v1047_v49 = vrot.slane %v2820_v45, 2  ;;  %v1050_v50 = vrot.slane %v2822_v46, 2  ;;  %v2834_v52 = vld [vmem:[#allocation2 + $0x68] sm:$0x3]  ;;  %v2846_v61 = vld [vmem:[#allocation2 + $0x80] sm:$0xff] }
 0x118   : > { %2259 = vrot.lane.b32.xlu0 %v2258_v37, %s2455_s18  ;;  %v2268_v51 = vpack.i.bf16 %v2824_v47, %v2812_v41  ;;  %v2836_v53 = vld [vmem:[#allocation2 + $0x78] sm:$0x3]  ;;  %v2841_v57 = vsel %vm1033_vm3, %v1043_v32, %v1044_v43  ;;  %v1052_v58 = vrot.slane %v2812_v41, 2  ;;  %v1053_v59 = vrot.slane %v2834_v52, 2  ;;  %v2857_v3 = vld [vmem:[#allocation2 + $0x88] sm:$0x3] }
 0x119   : > { %v1055_v60 = vrot.slane %v2824_v47, 2  ;;  %v975_v62 = vld [vmem:[#allocation2 + $0x18] sm:$0x3]  ;;  %v1286_v63 = vpack.c.bf16 %v2841_v57, %v2828_v48  ;;  %v2851_v0 = vsel %vm1033_vm3, %v1046_v31, %v1047_v49  ;;  %v2854_v1 = vsel %vm1033_vm3, %v1049_v36, %v1050_v50 }
 0x11a   : > { %v1056_v2 = vrot.slane %v2836_v53, 2  ;;  %v1289_v6 = vpack.c.bf16 %v2854_v1, %v2851_v0  ;;  %v2869_v7 = vsel %vm1033_vm3, %v1052_v58, %v1053_v59  ;;  %v1071_v8 = vrot.slane %v2846_v61, 2  ;;  %v2384_v34 = vld [vmem:[%s3255_s9 + $0x78] sm:$0xff]  }
 0x11b   : > { %2254 = vrot.lane.b32.xlu1 %v2253_v44, %s2456_s23  ;;  %2139 = vmatprep.mubr.msk.bf16.mxu0 %vm555_vm0, %v1286_v63  ;;  %v1037_v11 = vrot.slane %v2810_v40, 2  ;;  %v1038_v12 = vrot.slane %v975_v62, 2  ;;  %v1072_v13 = vrot.slane %v2857_v3, 2  ;;  %v2278_v18 = vpack.i.bf16 %v2780_v23, %v2846_v61  ;;  %v2385_v50 = vld [vmem:[%s3255_s9 + $0x38] sm:$0xff]  }
 0x11c   : > { %2269 = vrot.lane.b32.xlu0 %v2268_v51, %s2455_s18  ;;  %v2876_v10 = vsel %vm1033_vm3, %v1055_v60, %v1056_v2  ;;  %2140 = vmatmul.mubr.msk.bf16.vlgmr.msra.gmra.mrb[12].mxu0 %vm555_vm0, %v1289_v6  ;;  %v1012_v25 = vrot.slane %v2810_v40, 1  ;;  %v1013_v31 = vrot.slane %v975_v62, 1  ;;  %v1081_v33 = vsel %vm1033_vm3, %v1079_v29, %v1080_v9 }
 0x11d   : > { %v1292_v14 = vpack.c.bf16 %v2876_v10, %v2869_v7  ;;  %v1039_v22 = vsel %vm1033_vm3, %v1037_v11, %v1038_v12  ;;  %v2901_v32 = vsel %vm1033_vm3, %v1071_v8, %v1072_v13  ;;  %v2273_v36 = vpack.i.bf16 %v2812_v41, %v2795_v30  ;;  %2038 = vmatprep.subr.bf16.mxu1 %v2384_v34 }
 0x11e   : > { %v1036_v37 = vsel %vm1033_vm3, %v1034_v16, %v1035_v17  ;;  %v1015_v39 = vrot.slane %v2790_v27, 1  ;;  %v2283_v43 = vpack.i.bf16 %v2828_v48, %v1039_v22  ;;  %v1016_v44 = vrot.slane %v2802_v35, 1  ;;  %2039 = vmatpush3.bf16.msra.mxu1 %v2385_v50 }
 0x11f   : > { %2143 = vmatprep.mubr.msk.bf16.mxu0 %vm555_vm0, %v1292_v14  ;;  %2264 = vrot.lane.b32.xlu1 %v2263_v15, %s2456_s23  ;;  %v1018_v49 = vrot.slane %v2792_v28, 1  ;;  %v1019_v29 = vrot.slane %v2807_v38, 1  ;;  %v1295_v51 = vpack.c.bf16 %v1081_v33, %v2901_v32  ;;  %v2924_v58 = vsel %vm1008_vm4, %v1012_v25, %v1013_v31 }
 0x120   : > { %2279 = vrot.lane.b32.xlu0 %v2278_v18, %s2455_s18  ;;  %v2293_v35 = vpack.i.bf16 %v1039_v22, %v1036_v37  ;;  %v2288_v38 = vpack.i.bf16 %v2924_v58, %v1011_v56  ;;  %v2930_v59 = vsel %vm1008_vm4, %v1015_v39, %v1016_v44  ;;  %v1021_v63 = vrot.slane %v2788_v26, 1 }
 0x121   : > { %v2933_v60 = vsel %vm1008_vm4, %v1018_v49, %v1019_v29  ;;  %v1022_v2 = vrot.slane %v2820_v45, 1  ;;  %v1024_v4 = vrot.slane %v2795_v30, 1  ;;  %v1025_v5 = vrot.slane %v2822_v46, 1 }
 0x122   : > { %v2308_v62 = vpack.i.bf16 %v2933_v60, %v2930_v59  ;;  %v2313_v6 = vpack.i.bf16 %v2841_v57, %v2828_v48  ;;  %v2303_v8 = vpack.i.bf16 %v2851_v0, %v2841_v57  ;;  %v1027_v46 = vrot.slane %v2812_v41, 1 }
 0x123   : > { %2274 = vrot.lane.b32.xlu1 %v2273_v36, %s2456_s23  ;;  %v2950_v9 = vsel %vm1008_vm4, %v1021_v63, %v1022_v2  ;;  %v2953_v11 = vsel %vm1008_vm4, %v1024_v4, %v1025_v5  ;;  %v1028_v48 = vrot.slane %v2834_v52, 1  ;;  %v1030_v12 = vrot.slane %v2824_v47, 1 }
 0x124   : > { %2284 = vrot.lane.b32.xlu0 %v2283_v43, %s2457_s17  ;;  %2144 = vmatmul.mubr.msk.bf16.gmra.mrb[16].mxu0 %vm555_vm0, %v1295_v51  ;;  %v2328_v45 = vpack.i.bf16 %v2953_v11, %v2950_v9  ;;  %v1031_v57 = vrot.slane %v2836_v53, 1  ;;  %v2333_v13 = vpack.i.bf16 %v2854_v1, %v2851_v0  ;;  %v2323_v14 = vpack.i.bf16 %v2869_v7, %v2854_v1 }
 0x125   : > { %v2970_v15 = vsel %vm1008_vm4, %v1027_v46, %v1028_v48  ;;  %v1076_v53 = vrot.slane %v2780_v23, 1  ;;  %v1060_v0 = vrot.slane %v2846_v61, 1  ;;  %v1061_v1 = vrot.slane %v2857_v3, 1 }
 0x126   : > { %v2973_v16 = vsel %vm1008_vm4, %v1030_v12, %v1031_v57  ;;  %v1077_v17 = vrot.slane %v2814_v42, 1  ;;  %v2353_v18 = vpack.i.bf16 %v2876_v10, %v2869_v7  ;;  %v2343_v19 = vpack.i.bf16 %v2901_v32, %v2876_v10 }
 0x127   : > { %2294 = vrot.lane.b32.xlu1 %v2293_v35, %s2455_s18  ;;  %v2348_v52 = vpack.i.bf16 %v2973_v16, %v2970_v15  ;;  %v2991_v23 = vsel %vm1008_vm4, %v1060_v0, %v1061_v1  ;;  %v2363_v42 = vpack.i.bf16 %v2846_v61, %v2824_v47 }
 0x128   : > { %2289 = vrot.lane.b32.xlu0 %v2288_v38, %s2457_s17  ;;  %v1078_v20 = vsel %vm1008_vm4, %v1076_v53, %v1077_v17 }
 0x129   : > { %v2358_v3 = vpack.i.bf16 %v1078_v20, %v2991_v23 }
 0x12b   : > { %2309 = vrot.lane.b32.xlu1 %v2308_v62, %s2457_s17 }
 0x12c   : > { %2299 = vrot.lane.b32.xlu0 %v2308_v62, %s2456_s23 }
 0x12f   : > { %2314 = vrot.lane.b32.xlu1 %v2313_v6, %s2455_s18 }
 0x130   : > { %2304 = vrot.lane.b32.xlu0 %v2303_v8, %s2457_s17 }
 0x133   : > { %2329 = vrot.lane.b32.xlu1 %v2328_v45, %s2457_s17 }
 0x134   : > { %2319 = vrot.lane.b32.xlu0 %v2328_v45, %s2456_s23 }
 0x137   : > { %2334 = vrot.lane.b32.xlu1 %v2333_v13, %s2455_s18  ;;  %v3026_v13 = vpop.f32.mrb[0].mxu1 }
 0x138   : > { %2324 = vrot.lane.b32.xlu0 %v2323_v14, %s2457_s17  ;;  %v2123_v17 = vpop.f32.mrb[1].mxu1 }
 0x13b   : > { %2349 = vrot.lane.b32.xlu1 %v2348_v52, %s2457_s17 }
 0x13c   : > { %2339 = vrot.lane.b32.xlu0 %v2348_v52, %s2456_s23 }
 0x13f   : > { %2354 = vrot.lane.b32.xlu1 %v2353_v18, %s2455_s18  ;;  %s2392_s18 = sshll.u32 %s2458_s22, 4  ;;  %s2393_s18 = int_to_ptr.vmem [resolvable:$false] %s2392_s18 }
 0x140   : > { %2344 = vrot.lane.b32.xlu0 %v2343_v19, %s2457_s17 }
 0x143   : > { %2364 = vrot.lane.b32.xlu1 %v2363_v42, %s2456_s23 }
 0x144   : > { %2359 = vrot.lane.b32.xlu0 %v2358_v3, %s2456_s23  ;;  %s508_s23 = sand.u32 1, %s2442_s19  }
 0x145   : > { %s1941_s25 = sshll.u32 %s508_s23, 6  ;;  %s3189_s16 = scalar_lea.sflag [#allocation4], %s508_s23 }
 0x146   : > { %s3131_s26 = scalar_lea.vmem [#allocation3], %s1941_s25  ;;  %s2394_s25 = scalar_lea.vmem %s2393_s18, 2048 }
 0x147   : > { %s1829_s2 = sshll.u32 %s3131_s26, 4  ;;  %s3185_s2 = int_to_ptr.vmem [resolvable:$true] %s1829_s2 }
 0x148   : > { %s2388_s17 = scalar_lea.vmem %s3185_s2, 1024  ;;  %p2395_p0 = scmp.lt.s32.totalorder %s3185_s2, %s2393_s18 }
 0x149   : > { %p2389_p11 = scmp.ne.s32.totalorder %s3185_s2, %s2388_s17  ;;  %p2396_p1 = scmp.lt.s32.totalorder %s2394_s25, %s2388_s17 }
 0x14b   : > { %p2390_p12 = pnand %p2389_p11, %p2579_p5  ;;  %p2397_p2 = por %p2396_p1, %p2395_p0 }
 0x14d   : > { %p2391_p13 = pneg %p2390_p12 }
 0x14f   : > { %p2398_p3 = pnand %p2397_p2, %p2391_p13 }
 0x189   : > { %v2250_v7 = vpop.permute.xlu1 %2249 }
 0x18a   : > { %v3000_v10 = vpop.permute.xlu0 %2259  ;;  %v2252_v49 = vunpack.i.h.bf16 %v2250_v7  ;;  %v2251_v29 = vunpack.i.l.bf16 %v2250_v7 }
 0x18d   : > { %v2255_v21 = vpop.permute.xlu1 %2254 }
 0x18e   : > { %v3002_v22 = vpop.permute.xlu0 %2269  ;;  %v2257_v50 = vunpack.i.h.bf16 %v2255_v21  ;;  %v2256_v63 = vunpack.i.l.bf16 %v2255_v21 }
 0x191   : > { %v3004_v24 = vpop.permute.xlu1 %2264 }
 0x192   : > { %v3006_v25 = vpop.permute.xlu0 %2279  ;;  %v2267_v3 = vunpack.i.h.bf16 %v3004_v24  ;;  %v2266_v7 = vunpack.i.l.bf16 %v3004_v24 }
 0x195   : > { %v3008_v31 = vpop.permute.xlu1 %2274 }
 0x196   : > { %v2285_v32 = vpop.permute.xlu0 %2284 }
 0x197   : > { %v2287_v61 = vunpack.i.h.bf16 %v2285_v32  ;;  %v2286_v33 = vunpack.i.l.bf16 %v2285_v32 }
 0x199   : > { %v2295_v34 = vpop.permute.xlu1 %2294  ;;  %v1261_v51 = vsel %vm555_vm0, %v2930_v59, %v2287_v61  ;;  %v1260_v56 = vsel %vm555_vm0, %v2924_v58, %v2286_v33  ;;  %v2262_v33 = vunpack.i.h.bf16 %v3000_v10 }
 0x19a   : > { %v2297_v36 = vunpack.i.h.bf16 %v2295_v34  ;;  %v2296_v37 = vunpack.i.l.bf16 %v2295_v34  ;;  %v2290_v39 = vpop.permute.xlu0 %2289  ;;  %v1268_v46 = vsel %vm1242_vm5, %v1260_v56, %v2251_v29  ;;  %v1269_v58 = vsel %vm1242_vm5, %v1261_v51, %v2252_v49 }
 0x19b   : > { %v2292_v43 = vunpack.i.h.bf16 %v2290_v39  ;;  %v2291_v44 = vunpack.i.l.bf16 %v2290_v39  ;;  %v2261_v34 = vunpack.i.l.bf16 %v3000_v10 }
 0x19d   : > { %v1235_v35 = vsel %vm555_vm0, %v2810_v40, %v2292_v43  ;;  %v1234_v38 = vsel %vm555_vm0, %v2838_v55, %v2291_v44  ;;  %v2310_v62 = vpop.permute.xlu1 %2309 }
 0x19e   : > { %v1244_v2 = vsel %vm1242_vm5, %v1235_v35, %v2297_v36  ;;  %v1243_v4 = vsel %vm1242_vm5, %v1234_v38, %v2296_v37  ;;  %v2312_v5 = vunpack.i.h.bf16 %v2310_v62  ;;  %v2300_v6 = vpop.permute.xlu0 %2299  ;;  %v2311_v8 = vunpack.i.l.bf16 %v2310_v62 }
 0x19f   : > { %v2302_v45 = vunpack.i.h.bf16 %v2300_v6  ;;  %v2301_v59 = vunpack.i.l.bf16 %v2300_v6  ;;  %v1252_v40 = vsel %vm1251_vm6, %v1243_v4, %v2256_v63  ;;  %v1253_v48 = vsel %vm1251_vm6, %v1244_v2, %v2257_v50 }
 0x1a0   : > { %v1237_v14 = vsel %vm555_vm0, %v2792_v28, %v2312_v5  ;;  %v1236_v18 = vsel %vm555_vm0, %v2790_v27, %v2311_v8  ;;  %v1284_v42 = vpack.c.bf16 %v1253_v48, %v1252_v40  ;;  %v2271_v40 = vunpack.i.l.bf16 %v3002_v22 }
 0x1a1   : > { %v2315_v55 = vpop.permute.xlu1 %2314  ;;  %v1276_v12 = vsel %vm1251_vm6, %v1268_v46, %v2301_v59  ;;  %v1277_v57 = vsel %vm1251_vm6, %v1269_v58, %v2302_v45  ;;  %v2277_v45 = vunpack.i.h.bf16 %v3008_v31  ;;  %v2276_v59 = vunpack.i.l.bf16 %v3008_v31 }
 0x1a2   : > { %v2317_v52 = vunpack.i.h.bf16 %v2315_v55  ;;  %v2316_v53 = vunpack.i.l.bf16 %v2315_v55  ;;  %v2305_v0 = vpop.permute.xlu0 %2304  ;;  %v1285_v1 = vpack.c.bf16 %v1277_v57, %v1276_v12 }
 0x1a3   : > { %v2307_v19 = vunpack.i.h.bf16 %v2305_v0  ;;  %v2306_v20 = vunpack.i.l.bf16 %v2305_v0 }
 0x1a4   : > { %v1245_v21 = vsel %vm1242_vm5, %v1236_v18, %v2316_v53  ;;  %v1246_v32 = vsel %vm1242_vm5, %v1237_v14, %v2317_v52  ;;  %1484 = vmatprep.mubr.bf16.mxu1 %v1285_v1 }
 0x1a5   : > { %v1263_v28 = vsel %vm555_vm0, %v2950_v9, %v2307_v19  ;;  %v1262_v61 = vsel %vm555_vm0, %v2933_v60, %v2306_v20  ;;  %1485 = vmatmul.mubr.bf16.vlgmr.msra.gmra.mrb[4].mxu1 %v1284_v42  ;;  %v2330_v27 = vpop.permute.xlu1 %2329  ;;  %v1254_v24 = vsel %vm1251_vm6, %v1245_v21, %v2266_v7  ;;  %v1255_v37 = vsel %vm1251_vm6, %v1246_v32, %v2267_v3 }
 0x1a6   : > { %v2320_v36 = vpop.permute.xlu0 %2319  ;;  %v2332_v39 = vunpack.i.h.bf16 %v2330_v27  ;;  %v2331_v43 = vunpack.i.l.bf16 %v2330_v27  ;;  %v1270_v9 = vsel %vm1242_vm5, %v1262_v61, %v2261_v34  ;;  %v1271_v29 = vsel %vm1242_vm5, %v1263_v28, %v2262_v33 }
 0x1a7   : > { %v2322_v44 = vunpack.i.h.bf16 %v2320_v36  ;;  %v2321_v49 = vunpack.i.l.bf16 %v2320_v36  ;;  %v1287_v62 = vpack.c.bf16 %v1255_v37, %v1254_v24  ;;  %v2282_v7 = vunpack.i.h.bf16 %v3006_v25 }
 0x1a8   : > { %v1239_v63 = vsel %vm555_vm0, %v2795_v30, %v2332_v39  ;;  %v1238_v2 = vsel %vm555_vm0, %v2788_v26, %v2331_v43  ;;  %v2272_v26 = vunpack.i.h.bf16 %v3002_v22  ;;  %v2281_v21 = vunpack.i.l.bf16 %v3006_v25 }
 0x1a9   : > { %v2335_v60 = vpop.permute.xlu1 %2334  ;;  %v1278_v50 = vsel %vm1251_vm6, %v1270_v9, %v2321_v49  ;;  %v1279_v51 = vsel %vm1251_vm6, %v1271_v29, %v2322_v44 }
 0x1aa   : > { %v2337_v56 = vunpack.i.h.bf16 %v2335_v60  ;;  %v2336_v10 = vunpack.i.l.bf16 %v2335_v60  ;;  %v2325_v35 = vpop.permute.xlu0 %2324  ;;  %v1288_v38 = vpack.c.bf16 %v1279_v51, %v1278_v50 }
 0x1ab   : > { %v2327_v4 = vunpack.i.h.bf16 %v2325_v35  ;;  %v2326_v5 = vunpack.i.l.bf16 %v2325_v35 }
 0x1ac   : > { %v1247_v6 = vsel %vm1242_vm5, %v1238_v2, %v2336_v10  ;;  %v1248_v8 = vsel %vm1242_vm5, %v1239_v63, %v2337_v56  ;;  %1492 = vmatprep.mubr.bf16.mxu1 %v1288_v38 }
 0x1ad   : > { %v1265_v46 = vsel %vm555_vm0, %v2970_v15, %v2327_v4  ;;  %v1264_v30 = vsel %vm555_vm0, %v2953_v11, %v2326_v5  ;;  %1493 = vmatmul.mubr.bf16.gmra.mrb[8].mxu1 %v1287_v62  ;;  %v2350_v58 = vpop.permute.xlu1 %2349  ;;  %v1256_v57 = vsel %vm1251_vm6, %v1247_v6, %v2276_v59  ;;  %v1257_v14 = vsel %vm1251_vm6, %v1248_v8, %v2277_v45  ;;  %v1661_v4 = vld [vmem:[%s3258_s12] sm:$0xff]  ;;  %v1662_v5 = vld [vmem:[%s3258_s12 + $0x8] sm:$0xff]  ;;  %v1663_v6 = vld [vmem:[%s3258_s12 + $0x10] sm:$0xff] }
 0x1ae   : > { %v2340_v48 = vpop.permute.xlu0 %2339  ;;  %v1272_v31 = vsel %vm1242_vm5, %v1264_v30, %v2271_v40  ;;  %v1273_v15 = vsel %vm1242_vm5, %v1265_v46, %v2272_v26  ;;  %v2352_v0 = vunpack.i.h.bf16 %v2350_v58  ;;  %v2351_v1 = vunpack.i.l.bf16 %v2350_v58  ;;  %v1664_v45 = vld [vmem:[%s3258_s12 + $0x18] sm:$0xff] }
 0x1af   : > { %v2342_v55 = vunpack.i.h.bf16 %v2340_v48  ;;  %v2341_v12 = vunpack.i.l.bf16 %v2340_v48  ;;  %v1290_v18 = vpack.c.bf16 %v1257_v14, %v1256_v57  ;;  %v2193_v8 = vpack.c.bf16 %v1662_v5, %v1661_v4 }
 0x1b0   : > { %v1241_v27 = vsel %vm555_vm0, %v2824_v47, %v2352_v0  ;;  %v1240_v33 = vsel %vm555_vm0, %v2812_v41, %v2351_v1  ;;  %v2197_v59 = vpack.c.bf16 %v1664_v45, %v1663_v6 }
 0x1b1   : > { %v2355_v52 = vpop.permute.xlu1 %2354  ;;  %v1280_v11 = vsel %vm1251_vm6, %v1272_v31, %v2341_v12  ;;  %v1281_v53 = vsel %vm1251_vm6, %v1273_v15, %v2342_v55  ;;  %2194 = vmatprep.subr.bf16.mxu0 %v2193_v8  ;;  %v3112_v31 = vld [vmem:[%s3257_s11] ss:$0 sm:$0xff] }
 0x1b2   : > { %v2345_v17 = vpop.permute.xlu0 %2344  ;;  %v1291_v22 = vpack.c.bf16 %v1281_v53, %v1280_v11  ;;  %v2357_v19 = vunpack.i.h.bf16 %v2355_v52  ;;  %v2356_v20 = vunpack.i.l.bf16 %v2355_v52  ;;  %2196 = vmatpush3.bf16.msra.mxu0 %v2193_v8  ;;  %v777_v15 = vld [vmem:[%s3254_s8] sm:$0x1] }
 0x1b3   : > { %v2347_v42 = vunpack.i.h.bf16 %v2345_v17  ;;  %v2346_v3 = vunpack.i.l.bf16 %v2345_v17  ;;  %2198 = vmatprep.subr.bf16.mxu0 %v2197_v59  ;;  %v848_v17 = vadd.f32 %v3026_v13, %v777_v15 }
 0x1b4   : > { %1500 = vmatprep.mubr.bf16.mxu1 %v1291_v22  ;;  %v1249_v37 = vsel %vm1242_vm5, %v1240_v33, %v2356_v20  ;;  %v1250_v25 = vsel %vm1242_vm5, %v1241_v27, %v2357_v19 }
 0x1b5   : > { %v1267_v32 = vsel %vm555_vm0, %v2991_v23, %v2347_v42  ;;  %v1266_v28 = vsel %vm555_vm0, %v2973_v16, %v2346_v3  ;;  %1501 = vmatmul.mubr.bf16.gmra.mrb[12].mxu1 %v1290_v18  ;;  %v2365_v61 = vpop.permute.xlu1 %2364 }
 0x1b6   : > { %v2367_v34 = vunpack.i.h.bf16 %v2365_v61  ;;  %v2366_v36 = vunpack.i.l.bf16 %v2365_v61  ;;  %v2360_v24 = vpop.permute.xlu0 %2359  ;;  %v1274_v43 = vsel %vm1242_vm5, %v1266_v28, %v2281_v21  ;;  %v1275_v16 = vsel %vm1242_vm5, %v1267_v32, %v2282_v7  ;;  %2200 = vmatpush3.bf16.msra.mxu0 %v2197_v59 }
 0x1b7   : > { %v2362_v39 = vunpack.i.h.bf16 %v2360_v24  ;;  %v2361_v23 = vunpack.i.l.bf16 %v2360_v24  ;;  %v3126_v28 = vrot.slane %v848_v17, %v2734_v54 }
 0x1b8   : > { %v1258_v44 = vsel %vm1251_vm6, %v1249_v37, %v2366_v36  ;;  %v1259_v47 = vsel %vm1251_vm6, %v1250_v25, %v2367_v34 }
 0x1b9   : > { %v1282_v49 = vsel %vm1251_vm6, %v1274_v43, %v2361_v23  ;;  %v1283_v41 = vsel %vm1251_vm6, %v1275_v16, %v2362_v39  ;;  %v1293_v9 = vpack.c.bf16 %v1259_v47, %v1258_v44 }
 0x1ba   : > { %v1294_v29 = vpack.c.bf16 %v1283_v41, %v1282_v49 }
 0x1bc   : > { %1508 = vmatprep.mubr.bf16.mxu1 %v1294_v29 }
 0x1bd   : > { %1509 = vmatmul.mubr.bf16.gmra.mrb[16].mxu1 %v1293_v9 }
 0x1dd   : > { %v925_v60 = vpop.f32.mrb[10].mxu0 }
 0x1de   : > { %v2134_v50 = vpop.f32.mrb[11].mxu0  ;;  %v926_v46 = vadd.f32 1e-08, %v925_v60 }
 0x1e0   : > { %2386 = vrsqrt.f32 %v926_v46 }
 0x1ea   : > { %v2387_v58 = vpop.eup %2386 }
 0x1eb   : > { %v3107_v12 = vrot.slane %v2387_v58, %v2734_v54 }
 0x1ef   : > { %v2141_v51 = vpop.f32.mrb[12].mxu0 }
 0x1f0   : > { %v1551_v56 = vpop.f32.mrb[13].mxu0 }
 0x1f1   : > { %v2142_v10 = vpop.f32.mrb[14].mxu0 }
 0x1f2   : > { %v1554_v35 = vpop.f32.mrb[15].mxu0 }
 0x1f7   : > { %v3086_v38 = vpop.f32.mrb[16].mxu0 }
 0x1f8   : > { %v3088_v62 = vpop.f32.mrb[17].mxu0 }
 0x1f9   : > { %v3090_v63 = vpop.f32.mrb[18].mxu0 }
 0x1fa   : > { %v3092_v2 = vpop.f32.mrb[19].mxu0 }
 0x278   : > { %v2040_v30 = vpop.f32.mrb[4].mxu1 }
 0x279   : > { %v2041_v26 = vpop.f32.mrb[5].mxu1 }
 0x27a   : > { %v2042_v40 = vadd.f32 %v2041_v26, %v2040_v30  ;;  %v2043_v48 = vpop.f32.mrb[6].mxu1 }
 0x27b   : > { %v2044_v55 = vpop.f32.mrb[7].mxu1 }
 0x27c   : > { %v1552_v57 = vadd.f32 %v2042_v40, %v1551_v56  ;;  %v2045_v14 = vadd.f32 %v2044_v55, %v2043_v48 }
 0x27e   : > { %v1586_v52 = vmul.f32 %v3107_v12, %v1552_v57  ;;  %v1555_v11 = vadd.f32 %v2045_v14, %v1554_v35 }
 0x280   : > { %v1601_v53 = vadd.f32 %v3112_v31, %v1586_v52  ;;  %v1587_v0 = vmul.f32 %v3107_v12, %v1555_v11  ;;  %v2046_v1 = vpop.f32.mrb[8].mxu1 }
 0x281   : > { %v2047_v22 = vpop.f32.mrb[9].mxu1 }
 0x282   : > { %vm1609_vm7 = vcmp.ge.f32.partialorder %v1601_v53, 0.0  ;;  %v1617_v18 = vmul.f32 0.2, %v1601_v53  ;;  %v1602_v19 = vadd.f32 %v3112_v31, %v1587_v0  ;;  %v2048_v20 = vadd.f32 %v2047_v22, %v2046_v1  ;;  %v2049_v42 = vpop.f32.mrb[10].mxu1 }
 0x283   : > { %v2050_v3 = vpop.f32.mrb[11].mxu1 }
 0x284   : > { %vm1610_vm8 = vcmp.ge.f32.partialorder %v1602_v19, 0.0  ;;  %v1618_v7 = vmul.f32 0.2, %v1602_v19  ;;  %v1560_v21 = vadd.f32 %v2141_v51, %v2048_v20  ;;  %v2051_v32 = vadd.f32 %v2050_v3, %v2049_v42 }
 0x285   : > { %v1625_v61 = vsel %vm1609_vm7, %v1601_v53, %v1617_v18 }
 0x286   : > { %v1626_v27 = vsel %vm1610_vm8, %v1602_v19, %v1618_v7  ;;  %v1588_v13 = vmul.f32 %v3107_v12, %v1560_v21  ;;  %v1563_v33 = vadd.f32 %v2142_v10, %v2051_v32  ;;  %v1633_v34 = vmul.f32 1.4142135, %v1625_v61 }
 0x287   : > { %v1634_v36 = vmul.f32 1.4142135, %v1626_v27 }
 0x288   : > { %v1603_v24 = vadd.f32 %v3112_v31, %v1588_v13  ;;  %v1589_v37 = vmul.f32 %v3107_v12, %v1563_v33  ;;  %v2052_v25 = vpop.f32.mrb[12].mxu1  ;;  %1641 = vst.msk [vmem:[%s3131_s26] sm:$0xff] %vm555_vm0, %v1633_v34  ;;  %v1653_v54 = vmul.f32 %v3126_v28, %v1633_v34 }
 0x289   : > { %1642 = vst.msk [vmem:[%s3131_s26 + $0x8] sm:$0xff] %vm555_vm0, %v1634_v36  ;;  %v1654_v39 = vmul.f32 %v3126_v28, %v1634_v36  ;;  %v2053_v23 = vpop.f32.mrb[13].mxu1 }
 0x28a   : > { %vm1611_vm9 = vcmp.ge.f32.partialorder %v1603_v24, 0.0  ;;  %v1619_v43 = vmul.f32 0.2, %v1603_v24  ;;  %v1604_v16 = vadd.f32 %v3112_v31, %v1589_v37  ;;  %v2054_v44 = vadd.f32 %v2053_v23, %v2052_v25  ;;  %2155 = vmatprep.mubr.msk.f32.mxu0 %vm555_vm0, %v1653_v54  ;;  %v2055_v47 = vpop.f32.mrb[14].mxu1 }
 0x28b   : > { %v2056_v49 = vpop.f32.mrb[15].mxu1  ;;  %2156 = vmatmul.mubr.msk.f32.vlgmr.msra.gmra.mrb[20].mxu0 %vm555_vm0, %v1654_v39 }
 0x28c   : > { %vm1612_vm10 = vcmp.ge.f32.partialorder %v1604_v16, 0.0  ;;  %v1620_v41 = vmul.f32 0.2, %v1604_v16  ;;  %v1568_v9 = vadd.f32 %v2054_v44, %v3088_v62  ;;  %v2057_v29 = vadd.f32 %v2056_v49, %v2055_v47 }
 0x28d   : > { %v1627_v60 = vsel %vm1611_vm9, %v1603_v24, %v1619_v43 }
 0x28e   : > { %v1590_v50 = vmul.f32 %v3107_v12, %v1568_v9  ;;  %v1571_v51 = vadd.f32 %v2057_v29, %v3092_v2  ;;  %v1635_v56 = vmul.f32 1.4142135, %v1627_v60  ;;  %v1628_v10 = vsel %vm1612_vm10, %v1604_v16, %v1620_v41 }
 0x28f   : > { %v1636_v35 = vmul.f32 1.4142135, %v1628_v10 }
 0x290   : > { %v1605_v4 = vadd.f32 %v3112_v31, %v1590_v50  ;;  %v1591_v5 = vmul.f32 %v3107_v12, %v1571_v51  ;;  %v2058_v6 = vpop.f32.mrb[16].mxu1  ;;  %1643 = vst.msk [vmem:[%s3131_s26 + $0x10] sm:$0xff] %vm555_vm0, %v1635_v56  ;;  %v1655_v8 = vmul.f32 %v3126_v28, %v1635_v56 }
 0x291   : > { %v2059_v45 = vpop.f32.mrb[17].mxu1  ;;  %1644 = vst.msk [vmem:[%s3131_s26 + $0x18] sm:$0xff] %vm555_vm0, %v1636_v35  ;;  %v1656_v62 = vmul.f32 %v3126_v28, %v1636_v35 }
 0x292   : > { %vm1613_vm11 = vcmp.ge.f32.partialorder %v1605_v4, 0.0  ;;  %v1621_v59 = vmul.f32 0.2, %v1605_v4  ;;  %v1606_v2 = vadd.f32 %v3112_v31, %v1591_v5  ;;  %v2060_v46 = vadd.f32 %v2059_v45, %v2058_v6  ;;  %2158 = vmatprep.mubr.msk.f32.mxu0 %vm555_vm0, %v1655_v8  ;;  %v2061_v30 = vpop.f32.mrb[18].mxu1 }
 0x293   : > { %v2062_v58 = vpop.f32.mrb[19].mxu1  ;;  %2159 = vmatmul.mubr.msk.f32.gmra.mrb[22].mxu0 %vm555_vm0, %v1656_v62 }
 0x294   : > { %vm1614_vm12 = vcmp.ge.f32.partialorder %v1606_v2, 0.0  ;;  %v1622_v26 = vmul.f32 0.2, %v1606_v2  ;;  %v1576_v40 = vadd.f32 %v3086_v38, %v2060_v46  ;;  %v2063_v48 = vadd.f32 %v2062_v58, %v2061_v30 }
 0x295   : > { %v1629_v55 = vsel %vm1613_vm11, %v1605_v4, %v1621_v59 }
 0x296   : > { %v1592_v57 = vmul.f32 %v3107_v12, %v1576_v40  ;;  %v1579_v14 = vadd.f32 %v3090_v63, %v2063_v48  ;;  %v1637_v15 = vmul.f32 1.4142135, %v1629_v55  ;;  %v1630_v52 = vsel %vm1614_vm12, %v1606_v2, %v1622_v26 }
 0x297   : > { %v1638_v11 = vmul.f32 1.4142135, %v1630_v52 }
 0x298   : > { %v1607_v53 = vadd.f32 %v3112_v31, %v1592_v57  ;;  %v1593_v0 = vmul.f32 %v3107_v12, %v1579_v14  ;;  %1645 = vst.msk [vmem:[%s3131_s26 + $0x20] sm:$0xff] %vm555_vm0, %v1637_v15  ;;  %v1657_v1 = vmul.f32 %v3126_v28, %v1637_v15 }
 0x299   : > { %1646 = vst.msk [vmem:[%s3131_s26 + $0x28] sm:$0xff] %vm555_vm0, %v1638_v11  ;;  %v1658_v38 = vmul.f32 %v3126_v28, %v1638_v11 }
 0x29a   : > { %vm1615_vm13 = vcmp.ge.f32.partialorder %v1607_v53, 0.0  ;;  %v1623_v17 = vmul.f32 0.2, %v1607_v53  ;;  %v1608_v63 = vadd.f32 %v3112_v31, %v1593_v0  ;;  %2161 = vmatprep.mubr.msk.f32.mxu0 %vm555_vm0, %v1657_v1 }
 0x29b   : > { %2162 = vmatmul.mubr.msk.f32.gmra.mrb[24].mxu0 %vm555_vm0, %v1658_v38 }
 0x29c   : > { %vm1616_vm14 = vcmp.ge.f32.partialorder %v1608_v63, 0.0  ;;  %v1624_v12 = vmul.f32 0.2, %v1608_v63  ;;  %v1631_v22 = vsel %vm1615_vm13, %v1607_v53, %v1623_v17 }
 0x29d   : > { %v1639_v18 = vmul.f32 1.4142135, %v1631_v22 }
 0x29e   : > { %v1632_v19 = vsel %vm1616_vm14, %v1608_v63, %v1624_v12 }
 0x29f   : > { %1647 = vst.msk [vmem:[%s3131_s26 + $0x30] sm:$0xff] %vm555_vm0, %v1639_v18  ;;  %v1659_v20 = vmul.f32 %v3126_v28, %v1639_v18  ;;  %v1640_v42 = vmul.f32 1.4142135, %v1632_v19 }
 0x2a1   : > { %2164 = vmatprep.mubr.msk.f32.mxu0 %vm555_vm0, %v1659_v20  ;;  %1648 = vst.msk [vmem:[%s3131_s26 + $0x38] sm:$0xff] %vm555_vm0, %v1640_v42  ;;  %v1660_v31 = vmul.f32 %v3126_v28, %v1640_v42 }
 0x2a3   : > { %2165 = vmatmul.mubr.msk.f32.gmra.mrb[26].mxu0 %vm555_vm0, %v1660_v31 }
 0x2a4   : > { %2401 = shalt.err (!%p2398_p3)
}
 0x2a5   : > { %s2402_s23 = scalar_lea.hbm %s3183_s29, 1024  ;;  %s2406_s20 = scalar_lea.hbm %s3260_s14, 2048 }
 0x2a6   : > { %p2403_p4 = scmp.ne.s32.totalorder %s3183_s29, %s2402_s23  ;;  %p2407_p9 = scmp.lt.u32.totalorder %s3183_s29, %s3260_s14 }
 0x2a7   : > { %p2408_p10 = scmp.lt.u32.totalorder %s2406_s20, %s2402_s23  ;;  %p2410_p12 = scmp.lt.u32.totalorder %s2402_s23, %s3183_s29 }
 0x2a8   : > { %p2404_p7 = pnand %p2403_p4, %p2579_p5 }
 0x2a9   : > { %p2409_p11 = por %p2408_p10, %p2407_p9 }
 0x2aa   : > { %p2405_p8 = pneg %p2404_p7 }
 0x2ab   : > { %p2411_p13 = por %p2410_p12, %p2409_p11 }
 0x2ad   : > { %p2412_p0 = pnand %p2411_p13, %p2405_p8 }
 0x2af   : > { %2415 = shalt.err (!%p2412_p0)
}
 0x2b0   : > { %s2459_s17 = smov 128   ;;  %s2460_s18 = smov 8   ;;  %v1980_v3 = vld [vmem:[%s3259_s13] ss:$0 sm:$0xff]  ;;  %vm1801_vm15 = vcmask 23552  }
 0x2b1   : > { %2201 = dma.vmem_to_hbm [thread:$0]  (%p2579_p5), %s3185_s2, 1024, %s3183_s29, %s3189_s16, %s2459_s17, %s2459_s17, %s2460_s18  }
 0x2b2   : > { %s3277_s27 = sshll.u32 %s2604_s30, 6 }
 0x2b3   : > { %s533_s23 = scalar_lea.vmem %s3261_s15, %s3277_s27 }
 0x35e   : > { %v2157_v7 = vpop.f32.mrb[20].mxu0 }
 0x35f   : > { %v1768_v21 = vadd.f32 %v2157_v7, %v1980_v3  ;;  %v1762_v32 = vpop.f32.mrb[21].mxu0 }
 0x360   : > { %v1763_v28 = vadd.f32 %v1980_v3, %v1762_v32 }
 0x361   : > { %1803 = vst.msk [vmem:[%s533_s23 + $0x8] sm:$0xff] %vm1801_vm15, %v1768_v21 }
 0x362   : > { %1802 = vst.msk [vmem:[%s533_s23] sm:$0xff] %vm1801_vm15, %v1763_v28 }
 0x366   : > { %v2160_v61 = vpop.f32.mrb[22].mxu0 }
 0x367   : > { %v1778_v27 = vadd.f32 %v2160_v61, %v1980_v3  ;;  %v1772_v13 = vpop.f32.mrb[23].mxu0 }
 0x368   : > { %v1773_v33 = vadd.f32 %v1980_v3, %v1772_v13 }
 0x369   : > { %1805 = vst.msk [vmem:[%s533_s23 + $0x18] sm:$0xff] %vm1801_vm15, %v1778_v27 }
 0x36a   : > { %1804 = vst.msk [vmem:[%s533_s23 + $0x10] sm:$0xff] %vm1801_vm15, %v1773_v33 }
 0x36e   : > { %v2163_v34 = vpop.f32.mrb[24].mxu0 }
 0x36f   : > { %v1788_v36 = vadd.f32 %v2163_v34, %v1980_v3  ;;  %v1782_v24 = vpop.f32.mrb[25].mxu0 }
 0x370   : > { %v1783_v37 = vadd.f32 %v1980_v3, %v1782_v24 }
 0x371   : > { %1807 = vst.msk [vmem:[%s533_s23 + $0x28] sm:$0xff] %vm1801_vm15, %v1788_v36 }
 0x372   : > { %1806 = vst.msk [vmem:[%s533_s23 + $0x20] sm:$0xff] %vm1801_vm15, %v1783_v37 }
 0x376   : > { %v2166_v25 = vpop.f32.mrb[26].mxu0 }
 0x377   : > { %v1798_v54 = vadd.f32 %v2166_v25, %v1980_v3  ;;  %v1792_v39 = vpop.f32.mrb[27].mxu0 }
 0x378   : > { %v1793_v23 = vadd.f32 %v1980_v3, %v1792_v39 }
 0x379   : > { %1809 = vst.msk [vmem:[%s533_s23 + $0x38] sm:$0xff] %vm1801_vm15, %v1798_v54 }
 0x37a   : > { %1808 = vst.msk [vmem:[%s533_s23 + $0x30] sm:$0xff] %vm1801_vm15, %v1793_v23 }
 0x37b PF: > { %s3278_s28 = sld [smem:[#allocation6_spill]]  ;;  %p2207_p5 = scmp.ge.s32.totalorder %s2450_s21, 2 }
 0x37d   : > { %p2204_p1 = pnand %p2207_p5, %p2583_p6 }
 0x381   : > { %s1847_s2 = sand.u32 1, %s3278_s28  }
 0x382   : > { %s1848_s29 = scalar_lea.sflag [#allocation4], %s1847_s2 }
 0x383   : > { %2433 = dma.done.wait (!%p2204_p1), %s1848_s29, 1024  }
 0x384   : > { %2435 = vsyncadd (!%p2204_p1), %s1848_s29, 4294966272  ;;  %s3280_s21 = sld [smem:[#allocation8_spill]]  ;;  %s3281_s16 = sld [smem:[#allocation7_spill]] }
 0x385   : > { %s3282_s20 = sld [smem:[#allocation9_spill]]  ;;  %s3283_s18 = smov %s2442_s19 }
 0x38a   : > { %p26_p2 = scmp.ge.s32.totalorder %s3280_s21, 4   ;;  %s3284_s19 = smov %s3281_s16 }
 0x38c   :  { %28 = sbr.rel (!%p26_p2) target bundleno = 5 (0x5), region = 130 }
 0x393   :  { %1861 = vsyncpa [#allocation4], 1 }
 0x394   :  { %1863 = vsyncpa [#allocation4 + $0x1], 1 }

</bundles_post_ra>
